<compile_context>
chip_gen: v7x
topology: tpu7x:2x2x1
jax: 0.10.0
libtpu: 0.0.40
codegen_flags: <defaults>
</compile_context>

<pallas_src>
import jax
import jax.numpy as jnp
from jax.experimental import pallas as pl
from jax.experimental.pallas import tpu as pltpu


def _make_mlp_kernel(num_hidden, in_dim):
    """kernel(x_ref, W1, b1, ..., Wh, bh, W_last, b_last, out_ref).

    x_ref : [in_dim, tile_n]     (batch on lanes)
    W_i   : [d_out, d_in]        (PyTorch orientation)
    b_i   : [d_out, 1]
    out   : [out_dim, tile_n]
    """

    def kernel(*refs):
        x_ref = refs[0]
        out_ref = refs[-1]
        p = refs[1:-1]  # alternating weight / bias refs

        h = x_ref[...].astype(jnp.float32)            # [in_dim, tile_n]

        # --- first hidden layer: tiny contraction (in_dim ~ 2) -> VPU FMAs ---
        w0 = p[0][...]                                 # [h0, in_dim]
        b0 = p[1][...]                                 # [h0, 1]
        if in_dim <= 8:
            acc = jnp.zeros((w0.shape[0], h.shape[1]), jnp.float32)
            for k in range(in_dim):
                acc = acc + w0[:, k:k + 1] * h[k:k + 1, :]
        else:
            acc = jnp.dot(w0, h, preferred_element_type=jnp.float32)
        h = jnp.sin(acc + b0)

        # --- remaining hidden layers: small square matmuls on the MXU ---------
        # (intentionally NOT padded to 128/256 — MXU has huge slack; the sin
        #  polynomial on the VPU is the expected compute bound.)
        for i in range(1, num_hidden):
            w = p[2 * i][...]
            b = p[2 * i + 1][...]
            h = jnp.sin(jnp.dot(w, h, preferred_element_type=jnp.float32) + b)

        # --- final Linear (no activation) --------------------------------------
        w_last = p[2 * num_hidden][...]
        b_last = p[2 * num_hidden + 1][...]
        out = jnp.dot(w_last, h, preferred_element_type=jnp.float32) + b_last
        out_ref[...] = out.astype(out_ref.dtype)

    return kernel


def _choose_tiling(n, batch_tile):
    """Pick (tile, n_pad): tile divides n_pad, n_pad >= n, tile lane-friendly.

    Small batches run as a single full block (block_shape == array shape, so
    the (8,128) constraint is satisfied).  Larger batches use lane-dense tiles
    that are multiples of 128, capped so the grid has >= 2 steps (v7x two-TC
    sharding via dimension_semantics=("parallel",)).
    """
    bt = max(128, (int(batch_tile) // 128) * 128)
    if n <= 256 and n <= bt:
        return n, n
    cap = max(128, 128 * (pl.cdiv(n, 128) // 2))   # >= 2 grid steps when possible
    tile = min(bt, cap)
    n_pad = pl.cdiv(n, tile) * tile
    return tile, n_pad


def pinn_forward(x, params, *, batch_tile=2048):
    """Runs the PINN MLP forward in a single Pallas kernel.

    x:       [N, layers[0]] float32 (arbitrary N; padded internally).
    params:  list of (W, b), PyTorch orientation: W (d_out, d_in), b (d_out, 1).
    Returns: (out[:, 0:1], out[:, 1:2]) matching the PyTorch module.
    """
    n, in_dim = x.shape
    num_hidden = len(params) - 1
    assert num_hidden >= 1, "PINN needs at least one hidden Basicblock"
    out_dim = params[-1][0].shape[0]

    tile, n_pad = _choose_tiling(n, batch_tile)
    grid = (n_pad // tile,)

    x_t = x.T                                          # [in_dim, n]: batch on lanes
    if n_pad != n:
        x_t = jnp.pad(x_t, ((0, 0), (0, n_pad - n)))   # pad tail tile; sliced off after

    kernel = _make_mlp_kernel(num_hidden, in_dim)

    in_specs = [pl.BlockSpec((in_dim, tile), lambda i: (0, i))]
    flat_params = []
    for (w, b) in params:
        in_specs.append(pl.BlockSpec(tuple(w.shape), lambda i: (0, 0)))
        in_specs.append(pl.BlockSpec(tuple(b.shape), lambda i: (0, 0)))
        flat_params.extend([w, b])

    # Advisory cost estimate so XLA schedules this custom call sensibly inside
    # a larger PINN training step.
    flops = 2 * n_pad * sum(int(w.shape[0]) * int(w.shape[1]) for (w, _) in params)
    transcendentals = n_pad * sum(int(w.shape[0]) for (w, _) in params[:-1])
    param_bytes = 4 * sum(int(w.size) + int(b.size) for (w, b) in params)
    bytes_accessed = 4 * n_pad * (in_dim + out_dim) + param_bytes
    cost = pl.CostEstimate(flops=flops, transcendentals=transcendentals,
                           bytes_accessed=bytes_accessed)

    out_t = pl.pallas_call(
        kernel,
        out_shape=jax.ShapeDtypeStruct((out_dim, n_pad), jnp.float32),
        grid_spec=pltpu.PrefetchScalarGridSpec(
            num_scalar_prefetch=0,
            grid=grid,
            in_specs=in_specs,
            out_specs=pl.BlockSpec((out_dim, tile), lambda i: (0, i)),
        ),
        compiler_params=pltpu.CompilerParams(
            dimension_semantics=("parallel",)),
        cost_estimate=cost,
    )(x_t, *flat_params)

    # out_t is [out_dim, n_pad] lane-dense; drop padding and peel the two rows
    # outside the kernel (tiny XLA ops, avoids masked 1-lane stores in-kernel).
    out_t = out_t[:, :n]
    return out_t[0][:, None], out_t[1][:, None]


def init_params(layers, key):
    """Deterministic init mimicking nn.Linear's uniform(-1/sqrt(fan_in), ...).

    Weights in PyTorch (out_features, in_features) orientation, biases (out, 1).
    """
    params = []
    for d_in, d_out in zip(layers[:-1], layers[1:]):
        key, kw, kb = jax.random.split(key, 3)
        bound = 1.0 / (d_in ** 0.5)
        w = jax.random.uniform(kw, (d_out, d_in), jnp.float32, -bound, bound)
        b = jax.random.uniform(kb, (d_out, 1), jnp.float32, -bound, bound)
        params.append((w, b))
    return params


def pinn_reference(x, params):
    """Pure-JAX reference for validation (same math as the PyTorch module)."""
    h = x
    for (w, b) in params[:-1]:
        h = jnp.sin(h @ w.T + b[:, 0])
    w, b = params[-1]
    out = h @ w.T + b[:, 0]
    return out[:, 0:1], out[:, 1:2]


if __name__ == "__main__":
    # layers = [input_dim, hidden..., output_dim]; PINN convention: 2 in (x, t), 2 out.
    layers = [2, 32, 32, 32, 2]

    key = jax.random.PRNGKey(0)
    key, kx = jax.random.split(key)
    params = init_params(layers, key)

    # 1) Small demo batch: single full-block grid step (latency path).
    n_small = 16
    x_small = jax.random.normal(kx, (n_small, layers[0]), jnp.float32)
    o0, o1 = pinn_forward(x_small, params)
    jax.block_until_ready((o0, o1))
    r0, r1 = pinn_reference(x_small, params)
    assert o0.shape == (n_small, 1) and o1.shape == (n_small, 1)
    assert jnp.allclose(o0, r0, atol=1e-5, rtol=1e-5)
    assert jnp.allclose(o1, r1, atol=1e-5, rtol=1e-5)

    # 2) Non-multiple batch: exercises padding + multi-step tiled (grid > 1) path.
    n_tail = 300
    key, kx2 = jax.random.split(key)
    x_tail = jax.random.normal(kx2, (n_tail, layers[0]), jnp.float32)
    t0, t1 = pinn_forward(x_tail, params)      # default batch_tile=2048 -> tile=128, grid=3
    jax.block_until_ready((t0, t1))
    q0, q1 = pinn_reference(x_tail, params)
    assert t0.shape == (n_tail, 1) and t1.shape == (n_tail, 1)
    assert jnp.allclose(t0, q0, atol=1e-5, rtol=1e-5)
    assert jnp.allclose(t1, q1, atol=1e-5, rtol=1e-5)

    # 3) Exact-multiple batch with an explicit small tile: lane-dense 2-step grid.
    n_big = 256
    key, kx3 = jax.random.split(key)
    x_big = jax.random.normal(kx3, (n_big, layers[0]), jnp.float32)
    b0, b1 = pinn_forward(x_big, params, batch_tile=128)
    jax.block_until_ready((b0, b1))
    p0, p1 = pinn_reference(x_big, params)
    assert jnp.allclose(b0, p0, atol=1e-5, rtol=1e-5)
    assert jnp.allclose(b1, p1, atol=1e-5, rtol=1e-5)

    print("KERNEL_OK")
</pallas_src>

<mosaic_0001>
module attributes {stable_mosaic.version = 11 : i64} {
  func.func @kernel(%arg0: i32, %arg1: memref<2x16xf32, #tpu.memory_space<vmem>>, %arg2: memref<32x2xf32, #tpu.memory_space<vmem>>, %arg3: memref<32x1xf32, #tpu.memory_space<vmem>>, %arg4: memref<32x32xf32, #tpu.memory_space<vmem>>, %arg5: memref<32x1xf32, #tpu.memory_space<vmem>>, %arg6: memref<32x32xf32, #tpu.memory_space<vmem>>, %arg7: memref<32x1xf32, #tpu.memory_space<vmem>>, %arg8: memref<2x32xf32, #tpu.memory_space<vmem>>, %arg9: memref<2x1xf32, #tpu.memory_space<vmem>>, %arg10: memref<2x16xf32, #tpu.memory_space<vmem>>) attributes {dimension_semantics = [#tpu.dimension_semantics<parallel>], iteration_bounds = array<i64: 1>, scalar_prefetch = 0 : i64, scratch_operands = 0 : i64, tpu.core_type = #tpu.core_type<tc>, window_params = [{transform_indices = @transform_0, window_bounds = array<i64: 2, 16>}, {pipeline_mode = #tpu.pipeline_mode<synchronous>, transform_indices = @transform_1, window_bounds = array<i64: 32, 2>}, {pipeline_mode = #tpu.pipeline_mode<synchronous>, transform_indices = @transform_2, window_bounds = array<i64: 32, 1>}, {pipeline_mode = #tpu.pipeline_mode<synchronous>, transform_indices = @transform_3, window_bounds = array<i64: 32, 32>}, {pipeline_mode = #tpu.pipeline_mode<synchronous>, transform_indices = @transform_4, window_bounds = array<i64: 32, 1>}, {pipeline_mode = #tpu.pipeline_mode<synchronous>, transform_indices = @transform_5, window_bounds = array<i64: 32, 32>}, {pipeline_mode = #tpu.pipeline_mode<synchronous>, transform_indices = @transform_6, window_bounds = array<i64: 32, 1>}, {pipeline_mode = #tpu.pipeline_mode<synchronous>, transform_indices = @transform_7, window_bounds = array<i64: 2, 32>}, {pipeline_mode = #tpu.pipeline_mode<synchronous>, transform_indices = @transform_8, window_bounds = array<i64: 2, 1>}, {transform_indices = @transform_9, window_bounds = array<i64: 2, 16>}]} {
    %c0 = arith.constant 0 : index
    %c0_0 = arith.constant 0 : index
    %0 = vector.load %arg1[%c0, %c0_0] : memref<2x16xf32, #tpu.memory_space<vmem>>, vector<2x16xf32>
    %c0_1 = arith.constant 0 : index
    %c0_2 = arith.constant 0 : index
    %1 = vector.load %arg2[%c0_1, %c0_2] : memref<32x2xf32, #tpu.memory_space<vmem>>, vector<32x2xf32>
    %c0_3 = arith.constant 0 : index
    %c0_4 = arith.constant 0 : index
    %2 = vector.load %arg3[%c0_3, %c0_4] : memref<32x1xf32, #tpu.memory_space<vmem>>, vector<32x1xf32>
    %cst = arith.constant 0.000000e+00 : f32
    %3 = vector.broadcast %cst : f32 to vector<32x16xf32>
    %4 = vector.extract_strided_slice %1 {offsets = [0, 0], sizes = [32, 1], strides = [1, 1]} : vector<32x2xf32> to vector<32x1xf32>
    %5 = vector.extract_strided_slice %0 {offsets = [0, 0], sizes = [1, 16], strides = [1, 1]} : vector<2x16xf32> to vector<1x16xf32>
    %6 = vector.broadcast %4 : vector<32x1xf32> to vector<32x16xf32>
    %7 = vector.broadcast %5 : vector<1x16xf32> to vector<32x16xf32>
    %8 = arith.mulf %6, %7 : vector<32x16xf32>
    %9 = arith.addf %3, %8 : vector<32x16xf32>
    %10 = vector.extract_strided_slice %1 {offsets = [0, 1], sizes = [32, 1], strides = [1, 1]} : vector<32x2xf32> to vector<32x1xf32>
    %11 = vector.extract_strided_slice %0 {offsets = [1, 0], sizes = [1, 16], strides = [1, 1]} : vector<2x16xf32> to vector<1x16xf32>
    %12 = vector.broadcast %10 : vector<32x1xf32> to vector<32x16xf32>
    %13 = vector.broadcast %11 : vector<1x16xf32> to vector<32x16xf32>
    %14 = arith.mulf %12, %13 : vector<32x16xf32>
    %15 = arith.addf %9, %14 : vector<32x16xf32>
    %16 = vector.broadcast %2 : vector<32x1xf32> to vector<32x16xf32>
    %17 = arith.addf %15, %16 : vector<32x16xf32>
    %18 = math.sin %17 : vector<32x16xf32>
    %c0_5 = arith.constant 0 : index
    %c0_6 = arith.constant 0 : index
    %19 = vector.load %arg4[%c0_5, %c0_6] : memref<32x32xf32, #tpu.memory_space<vmem>>, vector<32x32xf32>
    %c0_7 = arith.constant 0 : index
    %c0_8 = arith.constant 0 : index
    %20 = vector.load %arg5[%c0_7, %c0_8] : memref<32x1xf32, #tpu.memory_space<vmem>>, vector<32x1xf32>
    %cst_9 = arith.constant dense<0.000000e+00> : vector<32x16xf32>
    %21 = tpu.matmul %19, %18, %cst_9 {dimension_numbers = #tpu.dot_dimension_numbers<[1], [0], [0], [1], [0, 0, 1, 1], [], []>} : vector<32x32xf32>, vector<32x16xf32>, vector<32x16xf32> -> vector<32x16xf32>
    %22 = vector.broadcast %20 : vector<32x1xf32> to vector<32x16xf32>
    %23 = arith.addf %21, %22 : vector<32x16xf32>
    %24 = math.sin %23 : vector<32x16xf32>
    %c0_10 = arith.constant 0 : index
    %c0_11 = arith.constant 0 : index
    %25 = vector.load %arg6[%c0_10, %c0_11] : memref<32x32xf32, #tpu.memory_space<vmem>>, vector<32x32xf32>
    %c0_12 = arith.constant 0 : index
    %c0_13 = arith.constant 0 : index
    %26 = vector.load %arg7[%c0_12, %c0_13] : memref<32x1xf32, #tpu.memory_space<vmem>>, vector<32x1xf32>
    %cst_14 = arith.constant dense<0.000000e+00> : vector<32x16xf32>
    %27 = tpu.matmul %25, %24, %cst_14 {dimension_numbers = #tpu.dot_dimension_numbers<[1], [0], [0], [1], [0, 0, 1, 1], [], []>} : vector<32x32xf32>, vector<32x16xf32>, vector<32x16xf32> -> vector<32x16xf32>
    %28 = vector.broadcast %26 : vector<32x1xf32> to vector<32x16xf32>
    %29 = arith.addf %27, %28 : vector<32x16xf32>
    %30 = math.sin %29 : vector<32x16xf32>
    %c0_15 = arith.constant 0 : index
    %c0_16 = arith.constant 0 : index
    %31 = vector.load %arg8[%c0_15, %c0_16] : memref<2x32xf32, #tpu.memory_space<vmem>>, vector<2x32xf32>
    %c0_17 = arith.constant 0 : index
    %c0_18 = arith.constant 0 : index
    %32 = vector.load %arg9[%c0_17, %c0_18] : memref<2x1xf32, #tpu.memory_space<vmem>>, vector<2x1xf32>
    %cst_19 = arith.constant dense<0.000000e+00> : vector<2x16xf32>
    %33 = tpu.matmul %31, %30, %cst_19 {dimension_numbers = #tpu.dot_dimension_numbers<[1], [0], [0], [1], [0, 0, 1, 1], [], []>} : vector<2x32xf32>, vector<32x16xf32>, vector<2x16xf32> -> vector<2x16xf32>
    %34 = vector.broadcast %32 : vector<2x1xf32> to vector<2x16xf32>
    %35 = arith.addf %33, %34 : vector<2x16xf32>
    %c0_20 = arith.constant 0 : index
    %c0_21 = arith.constant 0 : index
    %36 = vector.load %arg10[%c0_20, %c0_21] : memref<2x16xf32, #tpu.memory_space<vmem>>, vector<2x16xf32>
    tpu.vector_store %arg10[%c0_20, %c0_21], %35 {strides = array<i32>} : memref<2x16xf32, #tpu.memory_space<vmem>>, vector<2x16xf32>,
    return
  }
  func.func @transform_0(%arg0: i32) -> (i32, i32) {
    %c0_i32 = arith.constant 0 : i32
    %c0_i32_0 = arith.constant 0 : i32
    return %c0_i32, %arg0 : i32, i32
  }
  func.func @transform_1(%arg0: i32) -> (i32, i32) {
    %c0_i32 = arith.constant 0 : i32
    %c0_i32_0 = arith.constant 0 : i32
    %c0_i32_1 = arith.constant 0 : i32
    return %c0_i32, %c0_i32_0 : i32, i32
  }
  func.func @transform_2(%arg0: i32) -> (i32, i32) {
    %c0_i32 = arith.constant 0 : i32
    %c0_i32_0 = arith.constant 0 : i32
    %c0_i32_1 = arith.constant 0 : i32
    return %c0_i32, %c0_i32_0 : i32, i32
  }
  func.func @transform_3(%arg0: i32) -> (i32, i32) {
    %c0_i32 = arith.constant 0 : i32
    %c0_i32_0 = arith.constant 0 : i32
    %c0_i32_1 = arith.constant 0 : i32
    return %c0_i32, %c0_i32_0 : i32, i32
  }
  func.func @transform_4(%arg0: i32) -> (i32, i32) {
    %c0_i32 = arith.constant 0 : i32
    %c0_i32_0 = arith.constant 0 : i32
    %c0_i32_1 = arith.constant 0 : i32
    return %c0_i32, %c0_i32_0 : i32, i32
  }
  func.func @transform_5(%arg0: i32) -> (i32, i32) {
    %c0_i32 = arith.constant 0 : i32
    %c0_i32_0 = arith.constant 0 : i32
    %c0_i32_1 = arith.constant 0 : i32
    return %c0_i32, %c0_i32_0 : i32, i32
  }
  func.func @transform_6(%arg0: i32) -> (i32, i32) {
    %c0_i32 = arith.constant 0 : i32
    %c0_i32_0 = arith.constant 0 : i32
    %c0_i32_1 = arith.constant 0 : i32
    return %c0_i32, %c0_i32_0 : i32, i32
  }
  func.func @transform_7(%arg0: i32) -> (i32, i32) {
    %c0_i32 = arith.constant 0 : i32
    %c0_i32_0 = arith.constant 0 : i32
    %c0_i32_1 = arith.constant 0 : i32
    return %c0_i32, %c0_i32_0 : i32, i32
  }
  func.func @transform_8(%arg0: i32) -> (i32, i32) {
    %c0_i32 = arith.constant 0 : i32
    %c0_i32_0 = arith.constant 0 : i32
    %c0_i32_1 = arith.constant 0 : i32
    return %c0_i32, %c0_i32_0 : i32, i32
  }
  func.func @transform_9(%arg0: i32) -> (i32, i32) {
    %c0_i32 = arith.constant 0 : i32
    %c0_i32_0 = arith.constant 0 : i32
    return %c0_i32, %arg0 : i32, i32
  }
}

</mosaic_0001>

<bundles_post_ra>
// kernel: tpu_custom_call.1
= control target key start
LH: loop header
LB: loop body
LE: loop exit
PB: predicated region body
PF: predicated region fallthrough
CT: control target
= control target key end

     0   :  { %v1998_v2 = vmov 1   ;;  %v1999_v4 = vmov 0   ;;  %s2989_s0 = inlined_call_operand.vmem [shape: f32[2,16], index: 0, kind: input, shape index: {}]   ;;  %s2990_s1 = inlined_call_operand.vmem [shape: f32[32,2], index: 1, kind: input, shape index: {}]   ;;  %s2991_s2 = inlined_call_operand.vmem [shape: f32[32,1], index: 2, kind: input, shape index: {}]   ;;  %s2992_s3 = inlined_call_operand.vmem [shape: f32[32,32], index: 3, kind: input, shape index: {}]   ;;  %s2993_s4 = inlined_call_operand.vmem [shape: f32[32,1], index: 4, kind: input, shape index: {}]   ;;  %s2994_s5 = inlined_call_operand.vmem [shape: f32[32,32], index: 5, kind: input, shape index: {}]   ;;  %s2995_s6 = inlined_call_operand.vmem [shape: f32[32,1], index: 6, kind: input, shape index: {}]   ;;  %s2996_s7 = inlined_call_operand.vmem [shape: f32[2,32], index: 7, kind: input, shape index: {}]   ;;  %s2997_s8 = inlined_call_operand.vmem [shape: f32[2,1], index: 8, kind: input, shape index: {}]   ;;  %s2998_s9 = inlined_call_operand.hbm [shape: f32[2,16], index: 9, kind: output, shape index: {}]  }
   0x1   :  { %v36_v0 = vld [vmem:[%s2990_s1 + $0x10] sm:$0xff]  ;;  %v34_v1 = vld [vmem:[%s2990_s1] sm:$0xff]  ;;  %1922 = vset.pattern.permute.xlu0 %v1998_v2  ;;  %1920 = vset.pattern.permute.xlu1 %v1998_v2  ;;  %v35_v3 = vld [vmem:[%s2990_s1 + $0x8] sm:$0xff] }
   0x2   :  { %83 = vperm.xlu0 %1922, %v36_v0   ;;  %75 = vperm.xlu1 %1920, %v34_v1  }
   0x6   :  { %1923 = vset.pattern.permute.xlu0 %v1999_v4  ;;  %79 = vperm.xlu1 %1920, %v35_v3  }
   0x7   :  { %14 = vsyncpa [#allocation3], 0  ;;  %44 = vperm.xlu0 %1923, %v34_v1   ;;  %v37_v5 = vld [vmem:[%s2990_s1 + $0x18] sm:$0xff]  ;;  %v39_v6 = vld [vmem:[%s2991_s2 + $0x8] sm:$0xff]  ;;  %v62_v19 = vlaneseq  ;;  %vm570_vm1 = vcmask 261120   ;;  %s2009_s12 = smov [#allocation2]  }
   0x8   :  { %v38_v7 = vld [vmem:[%s2991_s2] sm:$0xff]  ;;  %v40_v9 = vld [vmem:[%s2991_s2 + $0x10] sm:$0xff]  ;;  %v41_v11 = vld [vmem:[%s2991_s2 + $0x18] sm:$0xff]  ;;  %s1713_s13 = sshll.u32 %s2009_s12, 4  ;;  %s1714_s13 = int_to_ptr.vmem [resolvable:$true] %s1713_s13 }
   0x9   :  { %v546_v8 = vld [vmem:[%s2993_s4] sm:$0xff]  ;;  %v548_v10 = vld [vmem:[%s2993_s4 + $0x10] sm:$0xff]  ;;  %v547_v13 = vld [vmem:[%s2993_s4 + $0x8] sm:$0xff]  ;;  %v63_v22 = vshrl.u32 %v62_v19, 7  ;;  %s1974_s14 = scalar_lea.vmem %s1714_s13, 32  ;;  %p1979_p1 = scmp.lt.s32.totalorder %s1714_s13, %s1714_s13 }
   0xa   :  { %1921 = vset.pattern.permute.xlu1 %v1999_v4  ;;  %v1088_v12 = vld [vmem:[%s2995_s6] sm:$0xff]  ;;  %v1090_v14 = vld [vmem:[%s2995_s6 + $0x10] sm:$0xff]  ;;  %v549_v15 = vld [vmem:[%s2993_s4 + $0x18] sm:$0xff]  ;;  %p1975_p0 = scmp.ne.s32.totalorder %s1714_s13, %s1974_s14  ;;  %p1980_p2 = scmp.lt.s32.totalorder %s1974_s14, %s1974_s14 }
   0xb   :  { %49 = vperm.xlu0 %1923, %v35_v3   ;;  %59 = vperm.xlu1 %1921, %v37_v5   ;;  %v1626_v16 = vld [vmem:[%s2997_s8] sm:$0x3]  ;;  %v1089_v17 = vld [vmem:[%s2995_s6 + $0x8] sm:$0xff]  ;;  %v1091_v18 = vld [vmem:[%s2995_s6 + $0x18] sm:$0xff]  ;;  %v64_v25 = vsub.s32 0, %v63_v22  ;;  %v92_v26 = vsub.s32 1, %v63_v22 }
   0xc   :  { %v33_v27 = vld [vmem:[%s2989_s0] sm:$0x3]  ;;  %v2003_v22 = vmov 2102212464   ;;  %p1981_p3 = por %p1980_p2, %p1979_p1 }
   0xd   :  { %v65_v30 = vrot.slane %v33_v27, %v64_v25  ;;  %v93_v31 = vrot.slane %v33_v27, %v92_v26  ;;  %v542_v3 = vld [vmem:[%s2992_s3] sm:$0xff] }
   0xe   :  { %1807 = vmatprep.mubr.msk.f32.mxu0 %vm570_vm1, %v542_v3  ;;  %p1982_p4 = pnand %p1981_p3, %p1975_p0 }
   0xf   :  { %54 = vperm.xlu0 %1923, %v36_v0   ;;  %1924 = vset.pattern.permute.xlu1 %v1998_v2 }
  0x10   :  { %87 = vperm.xlu1 %1924, %v37_v5  }
  0x13   :  { %109 = vperm.xlu0 %1923, %v39_v6  }
  0x14   :  { %1925 = vset.pattern.permute.xlu1 %v1999_v4 }
  0x15   :  { %104 = vperm.xlu1 %1925, %v38_v7  }
  0x17   :  { %552 = vperm.xlu0 %1923, %v546_v8  }
  0x19   :  { %114 = vperm.xlu1 %1925, %v40_v9  }
  0x1b   :  { %562 = vperm.xlu0 %1923, %v548_v10  }
  0x1d   :  { %119 = vperm.xlu1 %1925, %v41_v11  }
  0x1f   :  { %1094 = vperm.xlu0 %1923, %v1088_v12  }
  0x21   :  { %557 = vperm.xlu1 %1925, %v547_v13  }
  0x23   :  { %1104 = vperm.xlu0 %1923, %v1090_v14  }
  0x25   :  { %567 = vperm.xlu1 %1925, %v549_v15   ;;  %v2000_v15 = vmov 683565275  }
  0x27   :  { %1629 = vperm.xlu0 %1923, %v1626_v16  }
  0x29   :  { %1099 = vperm.xlu1 %1925, %v1089_v17   ;;  %v2001_v17 = vmov 2475754826  }
  0x2d   :  { %1109 = vperm.xlu1 %1925, %v1091_v18  }
  0x81   :  { %v76_v20 = vpop.permute.xlu1 %75  ;;  %v84_v21 = vpop.permute.xlu0 %83 }
  0x82   :  { %v94_v37 = vmul.f32 %v93_v31, %v76_v20  ;;  %v96_v44 = vmul.f32 %v93_v31, %v84_v21  ;;  %v2002_v20 = vmov 2131351028  }
  0x85   :  { %v80_v23 = vpop.permute.xlu1 %79 }
  0x86   :  { %v45_v24 = vpop.permute.xlu0 %44  ;;  %v95_v34 = vmul.f32 %v93_v31, %v80_v23 }
  0x87   :  { %v66_v35 = vmul.f32 %v65_v30, %v45_v24  ;;  %v2004_v24 = vmov 920167782  }
  0x89   :  { %v98_v42 = vadd.f32 %v94_v37, %v66_v35 }
  0x8a   :  { %v50_v28 = vpop.permute.xlu0 %49  ;;  %v60_v29 = vpop.permute.xlu1 %59 }
  0x8b   :  { %v67_v32 = vmul.f32 %v65_v30, %v50_v28  ;;  %v69_v59 = vmul.f32 %v65_v30, %v60_v29 }
  0x8d   :  { %v99_v38 = vadd.f32 %v95_v34, %v67_v32 }
  0x8e   :  { %v55_v33 = vpop.permute.xlu0 %54 }
  0x8f   :  { %v88_v36 = vpop.permute.xlu1 %87  ;;  %v68_v40 = vmul.f32 %v65_v30, %v55_v33 }
  0x90   :  { %v97_v57 = vmul.f32 %v93_v31, %v88_v36  ;;  %v2005_v31 = vmov 1326507024  }
  0x91   :  { %v100_v51 = vadd.f32 %v96_v44, %v68_v40 }
  0x92   :  { %v110_v39 = vpop.permute.xlu0 %109  ;;  %v101_v7 = vadd.f32 %v97_v57, %v69_v59 }
  0x93   :  { %v2114_v41 = vadd.f32 %v110_v39, %v99_v38 }
  0x94   :  { %v105_v43 = vpop.permute.xlu1 %104 }
  0x95   :  { %v230_v45 = vand.u32 2147483647, %v2114_v41  ;;  %v233_v46 = vand.u32 2139095040, %v2114_v41  ;;  %v2118_v47 = vadd.f32 %v105_v43, %v98_v42 }
  0x97   :  { %v234_v48 = vshrl.u32 %v233_v46, 23  ;;  %v237_v49 = vand.u32 8388607, %v230_v45  ;;  %v126_v50 = vand.u32 2147483647, %v2118_v47  ;;  %v129_v52 = vand.u32 2139095040, %v2118_v47 }
  0x98   :  { %v115_v53 = vpop.permute.xlu1 %114 }
  0x99   :  { %v1725_v54 = vadd.s32 4294967169, %v234_v48  ;;  %v133_v55 = vand.u32 8388607, %v126_v50  ;;  %v2126_v56 = vadd.f32 %v115_v53, %v100_v51  ;;  %v130_v58 = vshrl.u32 %v129_v52, 23 }
  0x9a   :  { %v238_v60 = vor.u32 8388608, %v237_v49 }
  0x9b   :  { %v240_v61 = vadd.s32 1, %v1725_v54  ;;  %v1721_v62 = vadd.s32 4294967169, %v130_v58  ;;  %v134_v63 = vor.u32 8388608, %v133_v55  ;;  %v334_v0 = vand.u32 2147483647, %v2126_v56 }
  0x9c   :  { %v337_v1 = vand.u32 2139095040, %v2126_v56  ;;  %v120_v2 = vpop.permute.xlu1 %119  ;;  %v2133_v10 = vshll.u32 %v238_v60, 8 }
  0x9d   :  { %vm241_vm0 = vcmp.gt.s32.totalorder %v240_v61, 0  ;;  %v136_v5 = vadd.s32 1, %v1721_v62  ;;  %v2135_v11 = vshll.u32 %v134_v63, 8  ;;  %v2139_v12 = vand.u32 8388607, %v334_v0 }
  0x9e   :  { %v242_v4 = vsel %vm241_vm0, %v240_v61, 0  ;;  %v338_v6 = vshrl.u32 %v337_v1, 23  ;;  %v2141_v13 = vadd.f32 %v120_v2, %v101_v7 }
  0x9f   :  { %v243_v8 = vshrl.u32 %v242_v4, 5  ;;  %v244_v9 = vand.u32 31, %v242_v4  ;;  %vm137_vm2 = vcmp.gt.s32.totalorder %v136_v5, 0 }
  0xa0   :  { %v2146_v19 = vadd.s32 4294967169, %v338_v6  ;;  %v138_v36 = vsel %vm137_vm2, %v136_v5, 0 }
  0xa1   :  { %v245_v14 = vsub.s32 32, %v244_v9  ;;  %v247_v16 = vshll.u32 %v2000_v15, %v244_v9  ;;  %v250_v18 = vshll.u32 %v2001_v17, %v244_v9  ;;  %v253_v21 = vshll.u32 %v2002_v20, %v244_v9 }
  0xa2   :  { %v256_v23 = vshll.u32 %v2003_v22, %v244_v9  ;;  %v259_v25 = vshll.u32 %v2004_v24, %v244_v9  ;;  %vm262_vm3 = vcmp.lt.s32.totalorder %v243_v8, 1  ;;  %vm263_vm4 = vcmp.lt.s32.totalorder %v243_v8, 2 }
  0xa3   :  { %v248_v26 = vshrl.u32 %v2001_v17, %v245_v14  ;;  %v251_v27 = vshrl.u32 %v2002_v20, %v245_v14  ;;  %v254_v28 = vshrl.u32 %v2003_v22, %v245_v14  ;;  %v246_v29 = vshrl.u32 %v2000_v15, %v245_v14 }
  0xa4   :  { %v257_v30 = vshrl.u32 %v2004_v24, %v245_v14  ;;  %v260_v32 = vshrl.u32 %v2005_v31, %v245_v14  ;;  %vm264_vm5 = vcmp.lt.s32.totalorder %v243_v8, 3  ;;  %vm265_vm6 = vcmp.lt.s32.totalorder %v243_v8, 4 }
  0xa5   :  { %v249_v33 = vor.u32 %v248_v26, %v247_v16  ;;  %v252_v34 = vor.u32 %v251_v27, %v250_v18  ;;  %v255_v35 = vor.u32 %v254_v28, %v253_v21  ;;  %v140_v39 = vand.u32 31, %v138_v36 }
  0xa6   :  { %v258_v37 = vor.u32 %v257_v30, %v256_v23  ;;  %v261_v38 = vor.u32 %v260_v32, %v259_v25  ;;  %v139_v55 = vshrl.u32 %v138_v36, 5 }
  0xa7   :  { %v266_v40 = vsel %vm262_vm3, %v246_v29, %v249_v33  ;;  %v267_v42 = vsel %vm265_vm6, %v255_v35, 2102212464  ;;  %v270_v43 = vsel %vm262_vm3, %v249_v33, %v252_v34  ;;  %v274_v44 = vsel %vm262_vm3, %v252_v34, %v255_v35 }
  0xa8   :  { %v268_v46 = vsel %vm264_vm5, %v252_v34, %v267_v42  ;;  %v271_v48 = vsel %vm265_vm6, %v258_v37, 920167782  ;;  %v275_v49 = vsel %vm265_vm6, %v261_v38, 1326507024  ;;  %v141_v51 = vsub.s32 32, %v140_v39 }
  0xa9   :  { %v269_v52 = vsel %vm263_vm4, %v266_v40, %v268_v46  ;;  %v272_v53 = vsel %vm264_vm5, %v255_v35, %v271_v48  ;;  %v276_v54 = vsel %vm264_vm5, %v258_v37, %v275_v49  ;;  %v143_v60 = vshll.u32 %v2000_v15, %v140_v39 }
  0xaa   :  { %v273_v57 = vsel %vm263_vm4, %v270_v43, %v272_v53  ;;  %v277_v58 = vsel %vm263_vm4, %v274_v44, %v276_v54  ;;  %v285_v59 = vmul.u32 %v2133_v10, %v269_v52  ;;  %v142_v2 = vshrl.u32 %v2000_v15, %v141_v51 }
  0xab   :  { %v2170_v61 = vmul.u32.u64.low %v2133_v10, %v277_v58  ;;  %v2171_v62 = vmul.u32.u64.high %v2133_v10, %v277_v58, %v2170_v61  ;;  %v2174_v63 = vmul.u32.u64.low %v2133_v10, %v273_v57  ;;  %v2175_v1 = vmul.u32.u64.high %v2133_v10, %v273_v57, %v2174_v63 }
  0xac   :  { %v144_v3 = vshrl.u32 %v2001_v17, %v141_v51  ;;  %v146_v4 = vshll.u32 %v2001_v17, %v140_v39  ;;  %v147_v5 = vshrl.u32 %v2002_v20, %v141_v51  ;;  %v149_v6 = vshll.u32 %v2002_v20, %v140_v39 }
  0xad   :  { %v150_v7 = vshrl.u32 %v2003_v22, %v141_v51  ;;  %v152_v8 = vshll.u32 %v2003_v22, %v140_v39  ;;  %v153_v9 = vshrl.u32 %v2004_v24, %v141_v51  ;;  %v155_v10 = vshll.u32 %v2004_v24, %v140_v39 }
  0xae   :  { %v145_v14 = vor.u32 %v144_v3, %v143_v60  ;;  %v148_v16 = vor.u32 %v147_v5, %v146_v4  ;;  %v156_v18 = vshrl.u32 %v2005_v31, %v141_v51  ;;  %vm287_vm7 = vc.u32 %v2171_v62, %v2174_v63 }
  0xaf   :  { %v288_v21 = vadd.s32 1, %v2175_v1  ;;  %v151_v23 = vor.u32 %v150_v7, %v149_v6  ;;  %vm158_vm8 = vcmp.lt.s32.totalorder %v139_v55, 1  ;;  %v154_v25 = vor.u32 %v153_v9, %v152_v8 }
  0xb0   :  { %v157_v26 = vor.u32 %v156_v18, %v155_v10  ;;  %vm159_vm9 = vcmp.lt.s32.totalorder %v139_v55, 2  ;;  %vm160_vm10 = vcmp.lt.s32.totalorder %v139_v55, 3  ;;  %vm161_vm11 = vcmp.lt.s32.totalorder %v139_v55, 4 }
  0xb1   :  { %v289_v27 = vsel %vm287_vm7, %v288_v21, %v2175_v1  ;;  %v162_v28 = vsel %vm158_vm8, %v142_v2, %v145_v14  ;;  %v166_v29 = vsel %vm158_vm8, %v145_v14, %v148_v16  ;;  %v163_v32 = vsel %vm161_vm11, %v151_v23, 2102212464 }
  0xb2   :  { %v290_v30 = vadd.s32 %v289_v27, %v285_v59  ;;  %v167_v33 = vsel %vm161_vm11, %v154_v25, 920167782  ;;  %v170_v34 = vsel %vm158_vm8, %v148_v16, %v151_v23  ;;  %v164_v35 = vsel %vm160_vm10, %v148_v16, %v163_v32 }
  0xb3   :  { %v168_v36 = vsel %vm160_vm10, %v151_v23, %v167_v33  ;;  %v171_v37 = vsel %vm161_vm11, %v157_v26, 1326507024  ;;  %v344_v38 = vadd.s32 1, %v2146_v19  ;;  %v342_v43 = vor.u32 8388608, %v2139_v12 }
  0xb4   :  { %v291_v39 = vadd.s32 536870912, %v290_v30  ;;  %v169_v40 = vsel %vm159_vm9, %v166_v29, %v168_v36  ;;  %v172_v42 = vsel %vm160_vm10, %v154_v25, %v171_v37  ;;  %v165_v44 = vsel %vm159_vm9, %v162_v28, %v164_v35 }
  0xb5   :  { %v173_v46 = vsel %vm159_vm9, %v170_v34, %v172_v42  ;;  %v2196_v48 = vmul.u32.u64.low %v2135_v11, %v169_v40  ;;  %v2197_v49 = vmul.u32.u64.high %v2135_v11, %v169_v40, %v2196_v48  ;;  %vm345_vm12 = vcmp.gt.s32.totalorder %v344_v38, 0 }
  0xb6   :  { %v2200_v51 = vshrl.u32 %v291_v39, 30  ;;  %v2203_v52 = vmul.u32.u64.low %v2135_v11, %v173_v46  ;;  %v2204_v19 = vmul.u32.u64.high %v2135_v11, %v173_v46, %v2203_v52  ;;  %v346_v53 = vsel %vm345_vm12, %v344_v38, 0 }
  0xb7   :  { %v348_v12 = vand.u32 31, %v346_v53  ;;  %v438_v57 = vand.u32 2147483647, %v2141_v13  ;;  %v286_v55 = vadd.s32 %v2174_v63, %v2171_v62  ;;  %v181_v58 = vmul.u32 %v2135_v11, %v165_v44 }
  0xb8   :  { %v293_v54 = vshll.u32 %v2200_v51, 30  ;;  %v184_v59 = vadd.s32 1, %v2197_v49  ;;  %v2211_v60 = vshll.u32 %v342_v43, 8  ;;  %vm183_vm13 = vc.u32 %v2204_v19, %v2196_v48 }
  0xb9   :  { %v349_v1 = vsub.s32 32, %v348_v12  ;;  %v441_v2 = vand.u32 2139095040, %v2141_v13  ;;  %v347_v4 = vshrl.u32 %v346_v53, 5  ;;  %v351_v5 = vshll.u32 %v2000_v15, %v348_v12 }
  0xba   :  { %v2213_v61 = vsub.s32 %v290_v30, %v293_v54  ;;  %v185_v3 = vsel %vm183_vm13, %v184_v59, %v2197_v49  ;;  %v354_v62 = vshll.u32 %v2001_v17, %v348_v12  ;;  %v357_v7 = vshll.u32 %v2002_v20, %v348_v12 }
  0xbb   :  { %v186_v63 = vadd.s32 %v185_v3, %v181_v58  ;;  %v352_v6 = vshrl.u32 %v2001_v17, %v349_v1  ;;  %v355_v8 = vshrl.u32 %v2002_v20, %v349_v1  ;;  %v358_v9 = vshrl.u32 %v2003_v22, %v349_v1 }
  0xbc   :  { %v296_v11 = vsub.s32 0, %v2213_v61  ;;  %v360_v14 = vshll.u32 %v2003_v22, %v348_v12  ;;  %v361_v16 = vshrl.u32 %v2004_v24, %v349_v1  ;;  %v363_v23 = vshll.u32 %v2004_v24, %v348_v12 }
  0xbd   :  { %v187_v18 = vadd.s32 536870912, %v186_v63  ;;  %v353_v21 = vor.u32 %v352_v6, %v351_v5  ;;  %v356_v25 = vor.u32 %v355_v8, %v354_v62  ;;  %v359_v26 = vor.u32 %v358_v9, %v357_v7 }
  0xbe   :  { %v1726_v10 = vmin.u32 %v296_v11, %v2213_v61  ;;  %v362_v27 = vor.u32 %v361_v16, %v360_v14  ;;  %v364_v28 = vshrl.u32 %v2005_v31, %v349_v1  ;;  %v350_v32 = vshrl.u32 %v2000_v15, %v349_v1 }
  0xbf   :  { %v188_v30 = vshrl.u32 %v187_v18, 30  ;;  %v442_v33 = vshrl.u32 %v441_v2, 23  ;;  %vm366_vm14 = vcmp.lt.s32.totalorder %v347_v4, 1  ;;  %vm367_vm15 = vcmp.lt.s32.totalorder %v347_v4, 2 }
  0xc0   :  { %v298_v29 = vclz %v1726_v10  ;;  %v365_v34 = vor.u32 %v364_v28, %v363_v23  ;;  %vm369_vm0 = vcmp.lt.s32.totalorder %v347_v4, 4  ;;  %v374_v38 = vsel %vm366_vm14, %v353_v21, %v356_v25 }
  0xc1   :  { %v189_v36 = vshll.u32 %v188_v30, 30  ;;  %v371_v37 = vsel %vm369_vm0, %v359_v26, 2102212464  ;;  %vm368_vm2 = vcmp.lt.s32.totalorder %v347_v4, 3  ;;  %v370_v39 = vsel %vm366_vm14, %v350_v32, %v353_v21 }
  0xc2   :  { %v1727_v35 = vadd.s32 4294967294, %v298_v29  ;;  %v375_v40 = vsel %vm369_vm0, %v362_v27, 920167782  ;;  %v379_v42 = vsel %vm369_vm0, %v365_v34, 1326507024  ;;  %v378_v46 = vsel %vm366_vm14, %v356_v25, %v359_v26 }
  0xc3   :  { %v2232_v43 = vsub.s32 %v186_v63, %v189_v36  ;;  %v376_v44 = vsel %vm368_vm2, %v359_v26, %v375_v40  ;;  %v372_v52 = vsel %vm368_vm2, %v356_v25, %v371_v37  ;;  %v380_v54 = vsel %vm368_vm2, %v362_v27, %v379_v42 }
  0xc4   :  { %vm1728_vm3 = vcmp.lt.s32.totalorder %v1727_v35, 0  ;;  %v377_v53 = vsel %vm367_vm15, %v374_v38, %v376_v44  ;;  %v445_v1 = vand.u32 8388607, %v438_v57  ;;  %v381_v2 = vsel %vm367_vm15, %v378_v46, %v380_v54 }
  0xc5   :  { %v301_v49 = vsel %vm1728_vm3, 0, %v1727_v35  ;;  %v192_v59 = vsub.s32 0, %v2232_v43  ;;  %v2240_v3 = vmul.u32.u64.low %v2211_v60, %v377_v53  ;;  %v2241_v5 = vmul.u32.u64.high %v2211_v60, %v377_v53, %v2240_v3 }
  0xc6   :  { %v302_v12 = vsub.s32 32, %v301_v49  ;;  %v306_v58 = vsub.s32 4294967266, %v301_v49  ;;  %v1733_v62 = vadd.s32 4294967169, %v442_v33  ;;  %v373_v7 = vsel %vm367_vm15, %v370_v39, %v372_v52 }
  0xc7   :  { %v1722_v6 = vmin.u32 %v192_v59, %v2232_v43  ;;  %v303_v8 = vshll.u32 %v2213_v61, %v301_v49  ;;  %v2248_v9 = vmul.u32.u64.low %v2211_v60, %v381_v2  ;;  %v2249_v14 = vmul.u32.u64.high %v2211_v60, %v381_v2, %v2248_v9 }
  0xc8   :  { %v304_v11 = vshrl.u32 %v286_v55, %v302_v12  ;;  %v307_v63 = vadd.s32 127, %v306_v58  ;;  %v448_v16 = vadd.s32 1, %v1733_v62  ;;  %v446_v21 = vor.u32 8388608, %v445_v1 }
  0xc9   :  { %v194_v18 = vclz %v1722_v6  ;;  %v212_v23 = vsub.s32 4, %v188_v30  ;;  %vm128_vm4 = vcmp.lt.s32.totalorder %v2118_v47, 0  ;;  %v392_v55 = vadd.s32 1, %v2241_v5 }
  0xca   :  { %v308_v10 = vshll.u32 %v307_v63, 23  ;;  %vm449_vm5 = vcmp.gt.s32.totalorder %v448_v16, 0  ;;  %v316_v25 = vsub.s32 4, %v2200_v51  ;;  %v305_v4 = vor.u32 %v304_v11, %v303_v8 }
  0xcb   :  { %v1723_v27 = vadd.s32 4294967294, %v194_v18  ;;  %v450_v61 = vsel %vm449_vm5, %v448_v16, 0  ;;  %v182_v28 = vadd.s32 %v2196_v48, %v2204_v19  ;;  %v389_v29 = vmul.u32 %v2211_v60, %v373_v7 }
  0xcc   :  { %v309_v26 = vor.u32 4788187, %v308_v10  ;;  %vm391_vm6 = vc.u32 %v2249_v14, %v2240_v3  ;;  %v452_v32 = vand.u32 31, %v450_v61  ;;  %v2260_v34 = vshll.u32 %v446_v21, 8 }
  0xcd   :  { %vm1724_vm7 = vcmp.lt.s32.totalorder %v1723_v27, 0  ;;  %v393_v33 = vsel %vm391_vm6, %v392_v55, %v2241_v5  ;;  %v2264_v35 = vsel %vm128_vm4, %v212_v23, %v188_v30  ;;  %v312_v48 = vcvt.s32.f32 %v305_v4 }
  0xce   :  { %v310_v36 = vand.u32 2147483647, %v309_v26  ;;  %v197_v37 = vsel %vm1724_vm7, 0, %v1723_v27  ;;  %v394_v38 = vadd.s32 %v393_v33, %v389_v29  ;;  %v453_v39 = vsub.s32 32, %v452_v32 }
  0xcf   :  { %v198_v19 = vsub.s32 32, %v197_v37  ;;  %v202_v60 = vsub.s32 4294967266, %v197_v37  ;;  %v451_v40 = vshrl.u32 %v450_v61, 5  ;;  %v199_v42 = vshll.u32 %v2232_v43, %v197_v37 }
  0xd0   :  { %v395_v44 = vadd.s32 536870912, %v394_v38  ;;  %v455_v46 = vshll.u32 %v2000_v15, %v452_v32  ;;  %v456_v49 = vshrl.u32 %v2001_v17, %v453_v39  ;;  %v458_v30 = vshll.u32 %v2001_v17, %v452_v32 }
  0xd1   :  { %v200_v52 = vshrl.u32 %v182_v28, %v198_v19  ;;  %v203_v53 = vadd.s32 127, %v202_v60  ;;  %v459_v54 = vshrl.u32 %v2002_v20, %v453_v39  ;;  %v313_v12 = vmul.f32 %v312_v48, %v310_v36 }
  0xd2   :  { %v2271_v58 = vshrl.u32 %v395_v44, 30  ;;  %v461_v59 = vshll.u32 %v2002_v20, %v452_v32  ;;  %v462_v1 = vshrl.u32 %v2003_v22, %v453_v39  ;;  %v457_v5 = vor.u32 %v456_v49, %v455_v46 }
  0xd3   :  { %v201_v2 = vor.u32 %v200_v52, %v199_v42  ;;  %v204_v43 = vshll.u32 %v203_v53, 23  ;;  %v460_v62 = vor.u32 %v459_v54, %v458_v30  ;;  %vm232_vm8 = vcmp.lt.s32.totalorder %v2114_v41, 0 }
  0xd4   :  { %v397_v11 = vshll.u32 %v2271_v58, 30  ;;  %v463_v63 = vor.u32 %v462_v1, %v461_v59  ;;  %v464_v6 = vshll.u32 %v2003_v22, %v452_v32  ;;  %v465_v7 = vshrl.u32 %v2004_v24, %v453_v39 }
  0xd5   :  { %v205_v8 = vor.u32 4788187, %v204_v43  ;;  %v454_v9 = vshrl.u32 %v2000_v15, %v453_v39  ;;  %v467_v16 = vshll.u32 %v2004_v24, %v452_v32  ;;  %v468_v10 = vshrl.u32 %v2005_v31, %v453_v39 }
  0xd6   :  { %vm2284_vm9 = vcmp.le.f32.partialorder %v126_v50, 0.7853982  ;;  %v314_v21 = vxor.u32 2147483648, %v313_v12  ;;  %v208_v23 = vcvt.s32.f32 %v201_v2  ;;  %v2288_v55 = vsub.s32 %v394_v38, %v397_v11 }
  0xd7   :  { %v466_v4 = vor.u32 %v465_v7, %v464_v6  ;;  %v206_v26 = vand.u32 2147483647, %v205_v8  ;;  %v469_v27 = vor.u32 %v468_v10, %v467_v16  ;;  %vm470_vm10 = vcmp.lt.s32.totalorder %v451_v40, 1 }
  0xd8   :  { %vm473_vm11 = vcmp.lt.s32.totalorder %v451_v40, 4  ;;  %v400_v61 = vsub.s32 0, %v2288_v55  ;;  %vm471_vm12 = vcmp.lt.s32.totalorder %v451_v40, 2  ;;  %v478_v29 = vsel %vm470_vm10, %v457_v5, %v460_v62 }
  0xd9   :  { %v475_v28 = vsel %vm473_vm11, %v463_v63, 2102212464  ;;  %v209_v32 = vmul.f32 %v208_v23, %v206_v26  ;;  %vm472_vm13 = vcmp.lt.s32.totalorder %v451_v40, 3  ;;  %v479_v50 = vsel %vm473_vm11, %v466_v4, 920167782 }
  0xda   :  { %v482_v33 = vsel %vm470_vm10, %v460_v62, %v463_v63  ;;  %v1730_v36 = vmin.u32 %v400_v61, %v2288_v55  ;;  %v474_v37 = vsel %vm470_vm10, %v454_v9, %v457_v5  ;;  %v480_v39 = vsel %vm472_vm13, %v463_v63, %v479_v50 }
  0xdb   :  { %v483_v38 = vsel %vm473_vm11, %v469_v27, 1326507024  ;;  %v210_v48 = vxor.u32 2147483648, %v209_v32  ;;  %v476_v19 = vsel %vm472_vm13, %v460_v62, %v475_v28  ;;  %v481_v60 = vsel %vm471_vm12, %v478_v29, %v480_v39 }
  0xdc   :  { %v484_v42 = vsel %vm472_vm13, %v466_v4, %v483_v38  ;;  %v402_v44 = vclz %v1730_v36  ;;  %v2295_v49 = vmul.u32.u64.low %v2260_v34, %v481_v60  ;;  %v2296_v52 = vmul.u32.u64.high %v2260_v34, %v481_v60, %v2295_v49 }
  0xdd   :  { %v485_v46 = vsel %vm471_vm12, %v482_v33, %v484_v42  ;;  %v315_v53 = vsel %vm232_vm8, %v314_v21, %v313_v12  ;;  %v211_v30 = vsel %vm128_vm4, %v210_v48, %v209_v32  ;;  %v477_v2 = vsel %vm471_vm12, %v474_v37, %v476_v19 }
  0xde   :  { %v2304_v54 = vmul.u32.u64.low %v2260_v34, %v485_v46  ;;  %v2305_v59 = vmul.u32.u64.high %v2260_v34, %v485_v46, %v2304_v54  ;;  %v1731_v1 = vadd.s32 4294967294, %v402_v44  ;;  %v214_v43 = vsel %vm2284_vm9, %v2118_v47, %v211_v30 }
  0xdf   :  { %v215_v5 = vsel %vm2284_vm9, 0, %v2264_v35  ;;  %1926 = vcosq.f32 %v214_v43  ;;  %vm2316_vm14 = vcmp.le.f32.partialorder %v230_v45, 0.7853982  ;;  %v496_v62 = vadd.s32 1, %v2296_v52 }
  0xe0   :  { %vm1732_vm15 = vcmp.lt.s32.totalorder %v1731_v1, 0  ;;  %1928 = vsinq.f32 %v214_v43  ;;  %v318_v40 = vsel %vm2316_vm14, %v2114_v41, %v315_v53  ;;  %v493_v63 = vmul.u32 %v2260_v34, %v477_v2 }
  0xe1   :  { %v405_v11 = vsel %vm1732_vm15, 0, %v1731_v1  ;;  %vm495_vm0 = vc.u32 %v2305_v59, %v2295_v49  ;;  %v317_v45 = vsel %vm232_vm8, %v316_v25, %v2200_v51  ;;  %v219_v7 = vadd.s32 3, %v215_v5 }
  0xe2   :  { %v410_v35 = vsub.s32 4294967266, %v405_v11  ;;  %v497_v6 = vsel %vm495_vm0, %v496_v62, %v2296_v52  ;;  %v406_v8 = vsub.s32 32, %v405_v11  ;;  %1930 = vcosq.f32 %v318_v40 }
  0xe3   :  { %v498_v9 = vadd.s32 %v497_v6, %v493_v63  ;;  %v319_v34 = vsel %vm2316_vm14, 0, %v317_v45  ;;  %1932 = vsinq.f32 %v318_v40  ;;  %v390_v10 = vadd.s32 %v2240_v3, %v2249_v14 }
  0xe4   :  { %v411_v16 = vadd.s32 127, %v410_v35  ;;  %v220_v23 = vand.u32 3, %v219_v7  ;;  %v323_v25 = vadd.s32 3, %v319_v34  ;;  %v407_v27 = vshll.u32 %v2288_v55, %v405_v11 }
  0xe5   :  { %v499_v18 = vadd.s32 536870912, %v498_v9  ;;  %v408_v4 = vshrl.u32 %v390_v10, %v406_v8  ;;  %vm218_vm6 = vweird.f32 %v2118_v47  ;;  %vm322_vm9 = vweird.f32 %v2114_v41 }
  0xe6   :  { %v412_v21 = vshll.u32 %v411_v16, 23  ;;  %vm225_vm2 = vcmp.eq.s32.totalorder %v220_v23, 2  ;;  %v324_v3 = vand.u32 3, %v323_v25  ;;  %vm222_vm3 = vcmp.eq.s32.totalorder %v220_v23, 0 }
  0xe7   :  { %v2337_v51 = vshrl.u32 %v499_v18, 30  ;;  %v409_v50 = vor.u32 %v408_v4, %v407_v27  ;;  %vm221_vm4 = vcmp.lt.s32.totalorder %v220_v23, 2  ;;  %v494_v47 = vadd.s32 %v2295_v49, %v2305_v59 }
  0xe8   :  { %v413_v61 = vor.u32 4788187, %v412_v21  ;;  %vm329_vm5 = vcmp.eq.s32.totalorder %v324_v3, 2  ;;  %vm325_vm7 = vcmp.lt.s32.totalorder %v324_v3, 2  ;;  %vm326_vm8 = vcmp.eq.s32.totalorder %v324_v3, 0 }
  0xe9   :  { %v1927_v26 = vpop.eup %1926  ;;  %v501_v28 = vshll.u32 %v2337_v51, 30  ;;  %v416_v42 = vcvt.s32.f32 %v409_v50  ;;  %vm336_vm11 = vcmp.lt.s32.totalorder %v2126_v56, 0  ;;  %vm2350_vm12 = vcmp.le.f32.partialorder %v334_v0, 0.7853982 }
  0xea   :  { %v1929_v29 = vpop.eup %1928  ;;  %v226_v32 = vxor.u32 2147483648, %v1927_v26  ;;  %v414_v39 = vand.u32 2147483647, %v413_v61  ;;  %v420_v16 = vsub.s32 4, %v2271_v58  ;;  %v524_v21 = vsub.s32 4, %v2337_v51 }
  0xeb   :  { %v502_v33 = vsub.s32 %v498_v9, %v501_v28  ;;  %v223_v36 = vxor.u32 2147483648, %v1929_v29  ;;  %vm440_vm13 = vcmp.lt.s32.totalorder %v2141_v13, 0  ;;  %vm439_vm14 = vcmp.le.f32.partialorder %v438_v57, 0.7853982 }
  0xec   :  { %v227_v14 = vsel %vm225_vm2, %v226_v32, %v1929_v29  ;;  %v1931_v37 = vpop.eup %1930  ;;  %v417_v53 = vmul.f32 %v416_v42, %v414_v39  ;;  %v421_v0 = vsel %vm336_vm11, %v420_v16, %v2271_v58 }
  0xed   :  { %v504_v38 = vsub.s32 0, %v502_v33  ;;  %v224_v48 = vsel %vm222_vm3, %v1927_v26, %v223_v36  ;;  %v1933_v19 = vpop.eup %1932  ;;  %v330_v55 = vxor.u32 2147483648, %v1931_v37  ;;  %v423_v25 = vsel %vm2350_vm12, 0, %v421_v0 }
  0xee   :  { %v228_v60 = vsel %vm221_vm4, %v224_v48, %v227_v14  ;;  %v327_v46 = vxor.u32 2147483648, %v1933_v19  ;;  %v418_v62 = vxor.u32 2147483648, %v417_v53  ;;  %v525_v26 = vsel %vm440_vm13, %v524_v21, %v2337_v51 }
  0xef   :  { %v1734_v44 = vmin.u32 %v504_v38, %v502_v33  ;;  %v331_v52 = vsel %vm329_vm5, %v330_v55, %v1933_v19  ;;  %v229_v54 = vsel %vm218_vm6, nan, %v228_v60  ;;  %v427_v61 = vadd.s32 3, %v423_v25  ;;  %v1084_v25 = vld [vmem:[%s2994_s5] sm:$0xff] }
  0xf0   :  { %v328_v1 = vsel %vm326_vm8, %v1931_v37, %v327_v46  ;;  %v419_v45 = vsel %vm336_vm11, %v418_v62, %v417_v53  ;;  %v527_v28 = vsel %vm439_vm14, 0, %v525_v26  ;;  %vm426_vm6 = vweird.f32 %v2126_v56  ;;  %v544_v53 = vld [vmem:[%s2992_s3 + $0x10] sm:$0xff]  ;;  %1821 = vmatprep.mubr.msk.f32.mxu1 %vm570_vm1, %v1084_v25 }
  0xf1   :  { %v506_v30 = vclz %v1734_v44  ;;  %v332_v2 = vsel %vm325_vm7, %v328_v1, %v331_v52  ;;  %v422_v49 = vsel %vm2350_vm12, %v2126_v56, %v419_v45  ;;  %v531_v32 = vadd.s32 3, %v527_v28  ;;  %v543_v52 = vld [vmem:[%s2992_s3 + $0x8] sm:$0xff]  ;;  %v545_v56 = vld [vmem:[%s2992_s3 + $0x18] sm:$0xff] }
  0xf2   :  { %v333_v5 = vsel %vm322_vm9, nan, %v332_v2  ;;  %1934 = vcosq.f32 %v422_v49  ;;  %v428_v50 = vand.u32 3, %v427_v61  ;;  %vm530_vm7 = vweird.f32 %v2141_v13 }
  0xf3   :  { %v1735_v43 = vadd.s32 4294967294, %v506_v30  ;;  %v1838_v12 = vpack.c.bf16 %v333_v5, %v229_v54  ;;  %1936 = vsinq.f32 %v422_v49  ;;  %v532_v3 = vand.u32 3, %v531_v32  ;;  %v553_v30 = vpop.permute.xlu0 %552 }
  0xf4   :  { %vm430_vm15 = vcmp.eq.s32.totalorder %v428_v50, 0  ;;  %vm433_vm0 = vcmp.eq.s32.totalorder %v428_v50, 2  ;;  %vm429_vm2 = vcmp.lt.s32.totalorder %v428_v50, 2 }
  0xf5   :  { %vm1736_vm10 = vcmp.lt.s32.totalorder %v1735_v43, 0  ;;  %1839 = vmatprep.subr.bf16.mxu0 %v1838_v12  ;;  %vm537_vm3 = vcmp.eq.s32.totalorder %v532_v3, 2  ;;  %vm534_vm4 = vcmp.eq.s32.totalorder %v532_v3, 0  ;;  %vm533_vm5 = vcmp.lt.s32.totalorder %v532_v3, 2 }
  0xf6   :  { %v509_v40 = vsel %vm1736_vm10, 0, %v1735_v43  ;;  %1841 = vmatpush3.bf16.msra.mxu0 %v1838_v12 }
  0xf7   :  { %v510_v11 = vsub.s32 32, %v509_v40  ;;  %v514_v63 = vsub.s32 4294967266, %v509_v40  ;;  %v511_v41 = vshll.u32 %v502_v33, %v509_v40 }
  0xf9   :  { %v512_v35 = vshrl.u32 %v494_v47, %v510_v11  ;;  %v515_v6 = vadd.s32 127, %v514_v63 }
  0xfb   :  { %v513_v8 = vor.u32 %v512_v35, %v511_v41  ;;  %v516_v9 = vshll.u32 %v515_v6, 23  ;;  %v563_v6 = vpop.permute.xlu0 %562 }
  0xfc   :  { %v1935_v29 = vpop.eup %1934 }
  0xfd   :  { %v517_v59 = vor.u32 4788187, %v516_v9  ;;  %v520_v10 = vcvt.s32.f32 %v513_v8  ;;  %v1937_v58 = vpop.eup %1936  ;;  %v434_v36 = vxor.u32 2147483648, %v1935_v29 }
  0xfe   :  { %v431_v33 = vxor.u32 2147483648, %v1937_v58 }
  0xff   :  { %v518_v34 = vand.u32 2147483647, %v517_v59  ;;  %v435_v37 = vsel %vm433_vm0, %v434_v36, %v1937_v58 }
 0x100   :  { %v432_v14 = vsel %vm430_vm15, %v1935_v29, %v431_v33 }
 0x101   :  { %v521_v18 = vmul.f32 %v520_v10, %v518_v34  ;;  %v436_v48 = vsel %vm429_vm2, %v432_v14, %v435_v37 }
 0x102   :  { %v437_v42 = vsel %vm426_vm6, nan, %v436_v48 }
 0x103   :  { %v522_v23 = vxor.u32 2147483648, %v521_v18 }
 0x105   :  { %v523_v4 = vsel %vm440_vm13, %v522_v23, %v521_v18 }
 0x106   :  { %v526_v27 = vsel %vm439_vm14, %v2141_v13, %v523_v4  ;;  %v558_v13 = vpop.permute.xlu1 %557 }
 0x107   :  { %1938 = vcosq.f32 %v526_v27 }
 0x108   :  { %1940 = vsinq.f32 %v526_v27 }
 0x10a   :  { %v568_v62 = vpop.permute.xlu1 %567 }
 0x111   :  { %v1939_v57 = vpop.eup %1938 }
 0x112   :  { %v1941_v39 = vpop.eup %1940  ;;  %v538_v51 = vxor.u32 2147483648, %v1939_v57 }
 0x113   :  { %v535_v38 = vxor.u32 2147483648, %v1941_v39 }
 0x114   :  { %v539_v19 = vsel %vm537_vm3, %v538_v51, %v1941_v39 }
 0x115   :  { %v536_v60 = vsel %vm534_vm4, %v1939_v57, %v535_v38 }
 0x116   :  { %v540_v55 = vsel %vm533_vm5, %v536_v60, %v539_v19 }
 0x117   :  { %v541_v44 = vsel %vm530_vm7, nan, %v540_v55 }
 0x118   :  { %v1842_v46 = vpack.c.bf16 %v541_v44, %v437_v42 }
 0x11a   :  { %1843 = vmatprep.subr.bf16.mxu0 %v1842_v46 }
 0x11b   :  { %1845 = vmatpush3.bf16.msra.mxu0 %v1842_v46 }
 0x11e   :  { %1808 = vmatmul.mubr.msk.f32.vlgmr.msra.gmra.mrb[0].mxu0 %vm570_vm1, %v543_v52 }
 0x11f   :  { %1810 = vmatprep.mubr.msk.f32.mxu0 %vm570_vm1, %v544_v53 }
 0x122   :  { %1811 = vmatmul.mubr.msk.f32.gmra.mrb[2].mxu0 %vm570_vm1, %v545_v56 }
 0x1f1   :  { %v1809_v54 = vpop.f32.mrb[0].mxu0 }
 0x1f2   :  { %v2383_v1 = vadd.f32 %v1809_v54, %v558_v13  ;;  %v649_v2 = vpop.f32.mrb[1].mxu0 }
 0x1f3   :  { %v2385_v43 = vadd.f32 %v649_v2, %v553_v30 }
 0x1f4   :  { %v772_v5 = vand.u32 2147483647, %v2383_v1  ;;  %v775_v12 = vand.u32 2139095040, %v2383_v1 }
 0x1f5   :  { %v668_v40 = vand.u32 2147483647, %v2385_v43  ;;  %v671_v47 = vand.u32 2139095040, %v2385_v43  ;;  %v1812_v11 = vpop.f32.mrb[2].mxu0 }
 0x1f6   :  { %v776_v63 = vshrl.u32 %v775_v12, 23  ;;  %v779_v45 = vand.u32 8388607, %v772_v5  ;;  %v2393_v41 = vadd.f32 %v1812_v11, %v568_v62  ;;  %v659_v35 = vpop.f32.mrb[3].mxu0 }
 0x1f7   :  { %v672_v7 = vshrl.u32 %v671_v47, 23  ;;  %v675_v8 = vand.u32 8388607, %v668_v40  ;;  %v2398_v59 = vadd.f32 %v659_v35, %v563_v6 }
 0x1f8   :  { %v1745_v9 = vadd.s32 4294967169, %v776_v63  ;;  %v980_v49 = vand.u32 2147483647, %v2393_v41  ;;  %v780_v16 = vor.u32 8388608, %v779_v45  ;;  %v983_v10 = vand.u32 2139095040, %v2393_v41 }
 0x1f9   :  { %v1741_v34 = vadd.s32 4294967169, %v672_v7  ;;  %v676_v21 = vor.u32 8388608, %v675_v8  ;;  %v876_v26 = vand.u32 2147483647, %v2398_v59  ;;  %v879_v57 = vand.u32 2139095040, %v2398_v59 }
 0x1fa   :  { %v782_v18 = vadd.s32 1, %v1745_v9  ;;  %v984_v23 = vshrl.u32 %v983_v10, 23  ;;  %v2403_v4 = vand.u32 8388607, %v980_v49  ;;  %v2410_v61 = vshll.u32 %v780_v16, 8 }
 0x1fb   :  { %v678_v0 = vadd.s32 1, %v1741_v34  ;;  %v2412_v50 = vshll.u32 %v676_v21, 8 }
 0x1fc   :  { %vm783_vm8 = vcmp.gt.s32.totalorder %v782_v18, 0  ;;  %v1753_v28 = vadd.s32 4294967169, %v984_v23  ;;  %v988_v3 = vor.u32 8388608, %v2403_v4 }
 0x1fd   :  { %v784_v27 = vsel %vm783_vm8, %v782_v18, 0  ;;  %vm679_vm9 = vcmp.gt.s32.totalorder %v678_v0, 0 }
 0x1fe   :  { %v785_v29 = vshrl.u32 %v784_v27, 5  ;;  %v786_v58 = vand.u32 31, %v784_v27  ;;  %v680_v32 = vsel %vm679_vm9, %v678_v0, 0  ;;  %v2420_v51 = vadd.s32 1, %v1753_v28 }
 0x1ff   :  { %v2414_v33 = vshrl.u32 %v680_v32, 5  ;;  %v682_v36 = vand.u32 31, %v680_v32 }
 0x200   :  { %v787_v14 = vsub.s32 32, %v786_v58  ;;  %v789_v37 = vshll.u32 %v2000_v15, %v786_v58  ;;  %v792_v39 = vshll.u32 %v2001_v17, %v786_v58  ;;  %v795_v38 = vshll.u32 %v2002_v20, %v786_v58 }
 0x201   :  { %v798_v48 = vshll.u32 %v2003_v22, %v786_v58  ;;  %v801_v19 = vshll.u32 %v2004_v24, %v786_v58  ;;  %vm804_vm10 = vcmp.lt.s32.totalorder %v785_v29, 1  ;;  %vm805_vm11 = vcmp.lt.s32.totalorder %v785_v29, 2 }
 0x202   :  { %v790_v60 = vshrl.u32 %v2001_v17, %v787_v14  ;;  %v793_v55 = vshrl.u32 %v2002_v20, %v787_v14  ;;  %v796_v42 = vshrl.u32 %v2003_v22, %v787_v14  ;;  %v788_v44 = vshrl.u32 %v2000_v15, %v787_v14 }
 0x203   :  { %v799_v46 = vshrl.u32 %v2004_v24, %v787_v14  ;;  %v802_v52 = vshrl.u32 %v2005_v31, %v787_v14  ;;  %vm806_vm12 = vcmp.lt.s32.totalorder %v785_v29, 3  ;;  %v683_v30 = vsub.s32 32, %v682_v36 }
 0x204   :  { %v791_v53 = vor.u32 %v790_v60, %v789_v37  ;;  %v794_v56 = vor.u32 %v793_v55, %v792_v39  ;;  %v797_v13 = vor.u32 %v796_v42, %v795_v38  ;;  %vm807_vm13 = vcmp.lt.s32.totalorder %v785_v29, 4 }
 0x205   :  { %v800_v54 = vor.u32 %v799_v46, %v798_v48  ;;  %v803_v2 = vor.u32 %v802_v52, %v801_v19  ;;  %v685_v12 = vshll.u32 %v2000_v15, %v682_v36  ;;  %v688_v7 = vshll.u32 %v2001_v17, %v682_v36 }
 0x206   :  { %v808_v62 = vsel %vm804_vm10, %v788_v44, %v791_v53  ;;  %v809_v47 = vsel %vm807_vm13, %v797_v13, 2102212464  ;;  %v812_v11 = vsel %vm804_vm10, %v791_v53, %v794_v56  ;;  %v816_v63 = vsel %vm804_vm10, %v794_v56, %v797_v13 }
 0x207   :  { %v810_v45 = vsel %vm806_vm12, %v794_v56, %v809_v47  ;;  %v813_v35 = vsel %vm807_vm13, %v800_v54, 920167782  ;;  %v817_v6 = vsel %vm807_vm13, %v803_v2, 1326507024  ;;  %v684_v16 = vshrl.u32 %v2000_v15, %v683_v30 }
 0x208   :  { %v814_v8 = vsel %vm806_vm12, %v797_v13, %v813_v35  ;;  %v818_v9 = vsel %vm806_vm12, %v800_v54, %v817_v6  ;;  %v686_v34 = vshrl.u32 %v2001_v17, %v683_v30  ;;  %v811_v10 = vsel %vm805_vm11, %v808_v62, %v810_v45 }
 0x209   :  { %v815_v18 = vsel %vm805_vm11, %v812_v11, %v814_v8  ;;  %v819_v21 = vsel %vm805_vm11, %v816_v63, %v818_v9  ;;  %v689_v0 = vshrl.u32 %v2002_v20, %v683_v30  ;;  %v691_v14 = vshll.u32 %v2002_v20, %v682_v36 }
 0x20a   :  { %v2446_v23 = vmul.u32.u64.low %v2410_v61, %v819_v21  ;;  %v2447_v25 = vmul.u32.u64.high %v2410_v61, %v819_v21, %v2446_v23  ;;  %v2450_v27 = vmul.u32.u64.low %v2410_v61, %v815_v18  ;;  %v2451_v28 = vmul.u32.u64.high %v2410_v61, %v815_v18, %v2450_v27 }
 0x20b   :  { %v687_v58 = vor.u32 %v686_v34, %v685_v12  ;;  %v690_v32 = vor.u32 %v689_v0, %v688_v7  ;;  %v692_v37 = vshrl.u32 %v2003_v22, %v683_v30  ;;  %v827_v29 = vmul.u32 %v2410_v61, %v811_v10 }
 0x20c   :  { %v694_v39 = vshll.u32 %v2003_v22, %v682_v36  ;;  %v695_v38 = vshrl.u32 %v2004_v24, %v683_v30  ;;  %v698_v48 = vshrl.u32 %v2005_v31, %v683_v30  ;;  %v697_v60 = vshll.u32 %v2004_v24, %v682_v36 }
 0x20d   :  { %v693_v19 = vor.u32 %v692_v37, %v691_v14  ;;  %vm700_vm14 = vcmp.lt.s32.totalorder %v2414_v33, 1  ;;  %vm701_vm15 = vcmp.lt.s32.totalorder %v2414_v33, 2  ;;  %vm829_vm0 = vc.u32 %v2447_v25, %v2450_v27 }
 0x20e   :  { %v830_v55 = vadd.s32 1, %v2451_v28  ;;  %v696_v42 = vor.u32 %v695_v38, %v694_v39  ;;  %vm702_vm2 = vcmp.lt.s32.totalorder %v2414_v33, 3  ;;  %v699_v61 = vor.u32 %v698_v48, %v697_v60 }
 0x20f   :  { %vm703_vm3 = vcmp.lt.s32.totalorder %v2414_v33, 4  ;;  %v704_v44 = vsel %vm700_vm14, %v684_v16, %v687_v58  ;;  %v708_v46 = vsel %vm700_vm14, %v687_v58, %v690_v32  ;;  %v712_v56 = vsel %vm700_vm14, %v690_v32, %v693_v19 }
 0x210   :  { %v831_v52 = vsel %vm829_vm0, %v830_v55, %v2451_v28  ;;  %v705_v36 = vsel %vm703_vm3, %v693_v19, 2102212464  ;;  %v709_v53 = vsel %vm703_vm3, %v696_v42, 920167782  ;;  %v713_v2 = vsel %vm703_vm3, %v699_v61, 1326507024 }
 0x211   :  { %v832_v13 = vadd.s32 %v831_v52, %v827_v29  ;;  %v706_v30 = vsel %vm702_vm2, %v690_v32, %v705_v36  ;;  %v710_v54 = vsel %vm702_vm2, %v693_v19, %v709_v53  ;;  %v714_v47 = vsel %vm702_vm2, %v696_v42, %v713_v2 }
 0x212   :  { %v707_v12 = vsel %vm701_vm15, %v704_v44, %v706_v30  ;;  %v711_v62 = vsel %vm701_vm15, %v708_v46, %v710_v54  ;;  %vm991_vm4 = vcmp.gt.s32.totalorder %v2420_v51, 0  ;;  %v715_v63 = vsel %vm701_vm15, %v712_v56, %v714_v47 }
 0x213   :  { %v833_v11 = vadd.s32 536870912, %v832_v13  ;;  %v2477_v45 = vmul.u32.u64.low %v2412_v50, %v711_v62  ;;  %v2478_v35 = vmul.u32.u64.high %v2412_v50, %v711_v62, %v2477_v45  ;;  %v992_v8 = vsel %vm991_vm4, %v2420_v51, 0 }
 0x214   :  { %v2482_v6 = vmul.u32.u64.low %v2412_v50, %v715_v63  ;;  %v2483_v7 = vmul.u32.u64.high %v2412_v50, %v715_v63, %v2482_v6  ;;  %v880_v9 = vshrl.u32 %v879_v57, 23  ;;  %v994_v34 = vand.u32 31, %v992_v8 }
 0x215   :  { %v2488_v16 = vshrl.u32 %v833_v11, 30  ;;  %v723_v33 = vmul.u32 %v2412_v50, %v707_v12  ;;  %v2493_v10 = vshll.u32 %v988_v3, 8  ;;  %v2497_v18 = vand.u32 8388607, %v876_v26 }
 0x216   :  { %v726_v51 = vadd.s32 1, %v2478_v35  ;;  %v993_v0 = vshrl.u32 %v992_v8, 5  ;;  %v995_v23 = vsub.s32 32, %v994_v34  ;;  %vm725_vm5 = vc.u32 %v2483_v7, %v2477_v45 }
 0x217   :  { %v835_v21 = vshll.u32 %v2488_v16, 30  ;;  %v997_v57 = vshll.u32 %v2000_v15, %v994_v34  ;;  %v1000_v50 = vshll.u32 %v2001_v17, %v994_v34  ;;  %v1749_v4 = vadd.s32 4294967169, %v880_v9 }
 0x218   :  { %v727_v28 = vsel %vm725_vm5, %v726_v51, %v2478_v35  ;;  %v998_v58 = vshrl.u32 %v2001_v17, %v995_v23  ;;  %v1003_v32 = vshll.u32 %v2002_v20, %v994_v34  ;;  %v1001_v37 = vshrl.u32 %v2002_v20, %v995_v23 }
 0x219   :  { %v2505_v3 = vsub.s32 %v832_v13, %v835_v21  ;;  %v728_v14 = vadd.s32 %v727_v28, %v723_v33  ;;  %v1004_v29 = vshrl.u32 %v2003_v22, %v995_v23  ;;  %v1006_v39 = vshll.u32 %v2003_v22, %v994_v34 }
 0x21a   :  { %v999_v48 = vor.u32 %v998_v58, %v997_v57  ;;  %v1007_v19 = vshrl.u32 %v2004_v24, %v995_v23  ;;  %v1009_v60 = vshll.u32 %v2004_v24, %v994_v34  ;;  %v1002_v42 = vor.u32 %v1001_v37, %v1000_v50 }
 0x21b   :  { %v838_v38 = vsub.s32 0, %v2505_v3  ;;  %v729_v55 = vadd.s32 536870912, %v728_v14  ;;  %v1005_v61 = vor.u32 %v1004_v29, %v1003_v32  ;;  %v1010_v44 = vshrl.u32 %v2005_v31, %v995_v23 }
 0x21c   :  { %v996_v52 = vshrl.u32 %v2000_v15, %v995_v23  ;;  %v1008_v36 = vor.u32 %v1007_v19, %v1006_v39  ;;  %vm1012_vm6 = vcmp.lt.s32.totalorder %v993_v0, 1  ;;  %vm1014_vm7 = vcmp.lt.s32.totalorder %v993_v0, 3 }
 0x21d   :  { %v1746_v46 = vmin.u32 %v838_v38, %v2505_v3  ;;  %v730_v53 = vshrl.u32 %v729_v55, 30  ;;  %v1011_v56 = vor.u32 %v1010_v44, %v1009_v60  ;;  %vm1015_vm8 = vcmp.lt.s32.totalorder %v993_v0, 4 }
 0x21e   :  { %v1016_v30 = vsel %vm1012_vm6, %v996_v52, %v999_v48  ;;  %v1017_v54 = vsel %vm1015_vm8, %v1005_v61, 2102212464  ;;  %v1020_v2 = vsel %vm1012_vm6, %v999_v48, %v1002_v42  ;;  %v1021_v47 = vsel %vm1015_vm8, %v1008_v36, 920167782 }
 0x21f   :  { %v840_v13 = vclz %v1746_v46  ;;  %v731_v12 = vshll.u32 %v730_v53, 30  ;;  %v1018_v62 = vsel %vm1014_vm7, %v1002_v42, %v1017_v54  ;;  %v1024_v11 = vsel %vm1012_vm6, %v1002_v42, %v1005_v61 }
 0x220   :  { %vm1013_vm9 = vcmp.lt.s32.totalorder %v993_v0, 2  ;;  %v1022_v35 = vsel %vm1014_vm7, %v1005_v61, %v1021_v47  ;;  %v1025_v6 = vsel %vm1015_vm8, %v1011_v56, 1326507024  ;;  %v828_v32 = vadd.s32 %v2450_v27, %v2447_v25 }
 0x221   :  { %v1747_v63 = vadd.s32 4294967294, %v840_v13  ;;  %v2521_v8 = vsub.s32 %v728_v14, %v731_v12  ;;  %v1019_v9 = vsel %vm1013_vm9, %v1016_v30, %v1018_v62  ;;  %v1023_v34 = vsel %vm1013_vm9, %v1020_v2, %v1022_v35 }
 0x222   :  { %v1026_v33 = vsel %vm1014_vm7, %v1008_v36, %v1025_v6  ;;  %v2525_v51 = vmul.u32.u64.low %v2493_v10, %v1023_v34  ;;  %v2526_v23 = vmul.u32.u64.high %v2493_v10, %v1023_v34, %v2525_v51  ;;  %v886_v37 = vadd.s32 1, %v1749_v4 }
 0x223   :  { %vm1748_vm10 = vcmp.lt.s32.totalorder %v1747_v63, 0  ;;  %v1027_v21 = vsel %vm1013_vm9, %v1024_v11, %v1026_v33  ;;  %v734_v50 = vsub.s32 0, %v2521_v8  ;;  %v1035_v38 = vmul.u32 %v2493_v10, %v1019_v9 }
 0x224   :  { %v843_v57 = vsel %vm1748_vm10, 0, %v1747_v63  ;;  %v2531_v28 = vmul.u32.u64.low %v2493_v10, %v1027_v21  ;;  %v2532_v58 = vmul.u32.u64.high %v2493_v10, %v1027_v21, %v2531_v28  ;;  %v884_v48 = vor.u32 8388608, %v2497_v18 }
 0x225   :  { %v844_v14 = vsub.s32 32, %v843_v57  ;;  %v848_v0 = vsub.s32 4294967266, %v843_v57  ;;  %v845_v29 = vshll.u32 %v2505_v3, %v843_v57  ;;  %v1742_v39 = vmin.u32 %v734_v50, %v2521_v8 }
 0x226   :  { %v1038_v55 = vadd.s32 1, %v2526_v23  ;;  %vm887_vm11 = vcmp.gt.s32.totalorder %v886_v37, 0  ;;  %vm1037_vm12 = vc.u32 %v2532_v58, %v2525_v51  ;;  %v754_v27 = vsub.s32 4, %v730_v53 }
 0x227   :  { %v846_v19 = vshrl.u32 %v828_v32, %v844_v14  ;;  %v849_v60 = vadd.s32 127, %v848_v0  ;;  %v736_v42 = vclz %v1742_v39  ;;  %v888_v25 = vsel %vm887_vm11, %v886_v37, 0 }
 0x228   :  { %vm670_vm13 = vcmp.lt.s32.totalorder %v2385_v43, 0  ;;  %v1039_v3 = vsel %vm1037_vm12, %v1038_v55, %v2526_v23  ;;  %v724_v10 = vadd.s32 %v2477_v45, %v2483_v7  ;;  %v890_v46 = vand.u32 31, %v888_v25 }
 0x229   :  { %v847_v4 = vor.u32 %v846_v19, %v845_v29  ;;  %v850_v61 = vshll.u32 %v849_v60, 23  ;;  %v1743_v18 = vadd.s32 4294967294, %v736_v42  ;;  %v1040_v44 = vadd.s32 %v1039_v3, %v1035_v38 }
 0x22a   :  { %v2547_v36 = vshrl.u32 %v888_v25, 5  ;;  %v2549_v56 = vshll.u32 %v884_v48, 8  ;;  %v858_v13 = vsub.s32 4, %v2488_v16  ;;  %v891_v54 = vsub.s32 32, %v890_v46 }
 0x22b   :  { %v851_v52 = vor.u32 4788187, %v850_v61  ;;  %vm1744_vm14 = vcmp.lt.s32.totalorder %v1743_v18, 0  ;;  %v1041_v30 = vadd.s32 536870912, %v1040_v44  ;;  %v2554_v2 = vsel %vm670_vm13, %v754_v27, %v730_v53 }
 0x22c   :  { %v854_v62 = vcvt.s32.f32 %v847_v4  ;;  %v739_v45 = vsel %vm1744_vm14, 0, %v1743_v18  ;;  %v893_v7 = vshll.u32 %v2000_v15, %v890_v46  ;;  %v896_v35 = vshll.u32 %v2001_v17, %v890_v46 }
 0x22d   :  { %v852_v12 = vand.u32 2147483647, %v851_v52  ;;  %v740_v47 = vsub.s32 32, %v739_v45  ;;  %v744_v11 = vsub.s32 4294967266, %v739_v45  ;;  %v2557_v63 = vshrl.u32 %v1041_v30, 30 }
 0x22e   :  { %v741_v9 = vshll.u32 %v2521_v8, %v739_v45  ;;  %v894_v34 = vshrl.u32 %v2001_v17, %v891_v54  ;;  %v897_v33 = vshrl.u32 %v2002_v20, %v891_v54  ;;  %vm774_vm15 = vcmp.lt.s32.totalorder %v2383_v1, 0 }
 0x22f   :  { %v855_v6 = vmul.f32 %v854_v62, %v852_v12  ;;  %v742_v53 = vshrl.u32 %v724_v10, %v740_v47  ;;  %v745_v21 = vadd.s32 127, %v744_v11  ;;  %v1043_v23 = vshll.u32 %v2557_v63, 30 }
 0x230   :  { %v900_v57 = vshrl.u32 %v2003_v22, %v891_v54  ;;  %v895_v50 = vor.u32 %v894_v34, %v893_v7  ;;  %v898_v28 = vor.u32 %v897_v33, %v896_v35  ;;  %v899_v32 = vshll.u32 %v2002_v20, %v890_v46 }
 0x231   :  { %vm908_vm0 = vcmp.lt.s32.totalorder %v2547_v36, 1  ;;  %v743_v14 = vor.u32 %v742_v53, %v741_v9  ;;  %v746_v8 = vshll.u32 %v745_v21, 23  ;;  %v2568_v0 = vsub.s32 %v1040_v44, %v1043_v23 }
 0x232   :  { %v902_v37 = vshll.u32 %v2003_v22, %v890_v46  ;;  %v901_v29 = vor.u32 %v900_v57, %v899_v32  ;;  %v903_v39 = vshrl.u32 %v2004_v24, %v891_v54  ;;  %v905_v38 = vshll.u32 %v2004_v24, %v890_v46 }
 0x233   :  { %v906_v48 = vshrl.u32 %v2005_v31, %v891_v54  ;;  %v856_v19 = vxor.u32 2147483648, %v855_v6  ;;  %v747_v60 = vor.u32 4788187, %v746_v8  ;;  %v1046_v55 = vsub.s32 0, %v2568_v0 }
 0x234   :  { %v892_v42 = vshrl.u32 %v2000_v15, %v891_v54  ;;  %v750_v25 = vcvt.s32.f32 %v743_v14  ;;  %v904_v27 = vor.u32 %v903_v39, %v902_v37  ;;  %vm910_vm2 = vcmp.lt.s32.totalorder %v2547_v36, 3 }
 0x235   :  { %v907_v4 = vor.u32 %v906_v48, %v905_v38  ;;  %v748_v61 = vand.u32 2147483647, %v747_v60  ;;  %v1754_v3 = vmin.u32 %v1046_v55, %v2568_v0  ;;  %vm911_vm3 = vcmp.lt.s32.totalorder %v2547_v36, 4 }
 0x236   :  { %v916_v10 = vsel %vm908_vm0, %v895_v50, %v898_v28  ;;  %v913_v18 = vsel %vm911_vm3, %v901_v29, 2102212464  ;;  %v917_v44 = vsel %vm911_vm3, %v904_v27, 920167782  ;;  %v920_v46 = vsel %vm908_vm0, %v898_v28, %v901_v29 }
 0x237   :  { %v921_v52 = vsel %vm911_vm3, %v907_v4, 1326507024  ;;  %v751_v30 = vmul.f32 %v750_v25, %v748_v61  ;;  %v1048_v54 = vclz %v1754_v3  ;;  %vm909_vm4 = vcmp.lt.s32.totalorder %v2547_v36, 2 }
 0x238   :  { %v918_v12 = vsel %vm910_vm2, %v901_v29, %v917_v44  ;;  %v857_v62 = vsel %vm774_vm15, %v856_v19, %v855_v6  ;;  %v912_v45 = vsel %vm908_vm0, %v892_v42, %v895_v50  ;;  %v922_v47 = vsel %vm910_vm2, %v904_v27, %v921_v52 }
 0x239   :  { %v919_v7 = vsel %vm909_vm4, %v916_v10, %v918_v12  ;;  %v752_v11 = vxor.u32 2147483648, %v751_v30  ;;  %v1755_v35 = vadd.s32 4294967294, %v1048_v54  ;;  %v914_v9 = vsel %vm910_vm2, %v898_v28, %v913_v18 }
 0x23a   :  { %v923_v34 = vsel %vm909_vm4, %v920_v46, %v922_v47  ;;  %v2603_v53 = vmul.u32.u64.low %v2549_v56, %v919_v7  ;;  %v2604_v21 = vmul.u32.u64.high %v2549_v56, %v919_v7, %v2603_v53  ;;  %vm2611_vm6 = vcmp.le.f32.partialorder %v668_v40, 0.7853982 }
 0x23b   :  { %v2599_v33 = vmul.u32.u64.low %v2549_v56, %v923_v34  ;;  %v2600_v6 = vmul.u32.u64.high %v2549_v56, %v923_v34, %v2599_v33  ;;  %v753_v23 = vsel %vm670_vm13, %v752_v11, %v751_v30  ;;  %vm1756_vm5 = vcmp.lt.s32.totalorder %v1755_v35, 0 }
 0x23c   :  { %v1051_v50 = vsel %vm1756_vm5, 0, %v1755_v35  ;;  %v915_v28 = vsel %vm909_vm4, %v912_v45, %v914_v9  ;;  %v756_v32 = vsel %vm2611_vm6, %v2385_v43, %v753_v23  ;;  %vm2622_vm7 = vcmp.le.f32.partialorder %v772_v5, 0.7853982 }
 0x23d   :  { %v1056_v8 = vsub.s32 4294967266, %v1051_v50  ;;  %v757_v40 = vsel %vm2611_vm6, 0, %v2554_v2  ;;  %1942 = vcosq.f32 %v756_v32  ;;  %v860_v36 = vsel %vm2622_vm7, %v2383_v1, %v857_v62 }
 0x23e   :  { %vm933_vm8 = vc.u32 %v2600_v6, %v2603_v53  ;;  %v934_v37 = vadd.s32 1, %v2604_v21  ;;  %1944 = vsinq.f32 %v756_v32  ;;  %v859_v5 = vsel %vm774_vm15, %v858_v13, %v2488_v16 }
 0x23f   :  { %v1052_v29 = vsub.s32 32, %v1051_v50  ;;  %v1057_v39 = vadd.s32 127, %v1056_v8  ;;  %v931_v2 = vmul.u32 %v2549_v56, %v915_v28  ;;  %v1036_v38 = vadd.s32 %v2525_v51, %v2532_v58 }
 0x240   :  { %v935_v48 = vsel %vm933_vm8, %v934_v37, %v2604_v21  ;;  %v761_v19 = vadd.s32 3, %v757_v40  ;;  %1946 = vcosq.f32 %v860_v36  ;;  %v861_v42 = vsel %vm2622_vm7, 0, %v859_v5 }
 0x241   :  { %v1058_v60 = vshll.u32 %v1057_v39, 23  ;;  %v936_v55 = vadd.s32 %v935_v48, %v931_v2  ;;  %1948 = vsinq.f32 %v860_v36  ;;  %v1054_v25 = vshrl.u32 %v1036_v38, %v1052_v29 }
 0x242   :  { %v865_v16 = vadd.s32 3, %v861_v42  ;;  %v1053_v13 = vshll.u32 %v2568_v0, %v1051_v50  ;;  %v762_v61 = vand.u32 3, %v761_v19  ;;  %vm760_vm12 = vweird.f32 %v2385_v43 }
 0x243   :  { %v937_v27 = vadd.s32 536870912, %v936_v55  ;;  %v1059_v4 = vor.u32 4788187, %v1058_v60  ;;  %vm864_vm0 = vweird.f32 %v2383_v1  ;;  %vm982_vm3 = vcmp.lt.s32.totalorder %v2393_v41, 0 }
 0x244   :  { %v1055_v58 = vor.u32 %v1054_v25, %v1053_v13  ;;  %v866_v44 = vand.u32 3, %v865_v16  ;;  %vm767_vm9 = vcmp.eq.s32.totalorder %v762_v61, 2  ;;  %vm763_vm10 = vcmp.lt.s32.totalorder %v762_v61, 2 }
 0x245   :  { %v2647_v56 = vshrl.u32 %v937_v27, 30  ;;  %v1060_v46 = vand.u32 2147483647, %v1059_v4  ;;  %vm764_vm11 = vcmp.eq.s32.totalorder %v762_v61, 0  ;;  %v932_v36 = vadd.s32 %v2603_v53, %v2600_v6 }
 0x246   :  { %v1062_v62 = vcvt.s32.f32 %v1055_v58  ;;  %vm871_vm13 = vcmp.eq.s32.totalorder %v866_v44, 2  ;;  %vm868_vm14 = vcmp.eq.s32.totalorder %v866_v44, 0  ;;  %vm867_vm15 = vcmp.lt.s32.totalorder %v866_v44, 2 }
 0x247   :  { %v1943_v51 = vpop.eup %1942  ;;  %v939_v3 = vshll.u32 %v2647_v56, 30  ;;  %vm2659_vm4 = vcmp.le.f32.partialorder %v980_v49, 0.7853982  ;;  %v1066_v60 = vsub.s32 4, %v2557_v63  ;;  %v962_v25 = vsub.s32 4, %v2647_v56 }
 0x248   :  { %v1945_v10 = vpop.eup %1944  ;;  %v768_v18 = vxor.u32 2147483648, %v1943_v51  ;;  %v1063_v9 = vmul.f32 %v1062_v62, %v1060_v46  ;;  %vm878_vm5 = vcmp.lt.s32.totalorder %v2398_v59, 0  ;;  %vm877_vm6 = vcmp.le.f32.partialorder %v876_v26, 0.7853982 }
 0x249   :  { %v940_v52 = vsub.s32 %v936_v55, %v939_v3  ;;  %v765_v30 = vxor.u32 2147483648, %v1945_v10  ;;  %v1067_v49 = vsel %vm982_vm3, %v1066_v60, %v2557_v63  ;;  %v963_v4 = vsel %vm878_vm5, %v962_v25, %v2647_v56 }
 0x24a   :  { %v1947_v54 = vpop.eup %1946  ;;  %v769_v12 = vsel %vm767_vm9, %v768_v18, %v1945_v10  ;;  %v1064_v32 = vxor.u32 2147483648, %v1063_v9  ;;  %v1069_v16 = vsel %vm2659_vm4, 0, %v1067_v49  ;;  %v965_v3 = vsel %vm877_vm6, 0, %v963_v4 }
 0x24b   :  { %v1949_v0 = vpop.eup %1948  ;;  %v942_v45 = vsub.s32 0, %v940_v52  ;;  %v766_v7 = vsel %vm764_vm11, %v1943_v51, %v765_v30  ;;  %v872_v47 = vxor.u32 2147483648, %v1947_v54  ;;  %v1073_v51 = vadd.s32 3, %v1069_v16 }
 0x24c   :  { %v770_v11 = vsel %vm763_vm10, %v766_v7, %v769_v12  ;;  %v869_v35 = vxor.u32 2147483648, %v1949_v0  ;;  %v1065_v40 = vsel %vm982_vm3, %v1064_v32, %v1063_v9  ;;  %v969_v18 = vadd.s32 3, %v965_v3 }
 0x24d   :  { %v1750_v34 = vmin.u32 %v942_v45, %v940_v52  ;;  %v873_v33 = vsel %vm871_vm13, %v872_v47, %v1949_v0  ;;  %v771_v21 = vsel %vm760_vm12, nan, %v770_v11  ;;  %v1068_v38 = vsel %vm2659_vm4, %v2393_v41, %v1065_v40 }
 0x24e   :  { %v870_v23 = vsel %vm868_vm14, %v1947_v54, %v869_v35  ;;  %1950 = vcosq.f32 %v1068_v38  ;;  %v1074_v10 = vand.u32 3, %v1073_v51  ;;  %vm1072_vm12 = vweird.f32 %v2393_v41  ;;  %v1087_v41 = vld [vmem:[%s2994_s5 + $0x18] sm:$0xff] }
 0x24f   :  { %v944_v57 = vclz %v1750_v34  ;;  %v874_v50 = vsel %vm867_vm15, %v870_v23, %v873_v33  ;;  %1952 = vsinq.f32 %v1068_v38  ;;  %vm968_vm14 = vweird.f32 %v2398_v59  ;;  %v1085_v34 = vld [vmem:[%s2994_s5 + $0x8] sm:$0xff]  ;;  %v1086_v33 = vld [vmem:[%s2994_s5 + $0x10] sm:$0xff] }
 0x250   :  { %v875_v28 = vsel %vm864_vm0, nan, %v874_v50  ;;  %vm1076_vm7 = vcmp.eq.s32.totalorder %v1074_v10, 0  ;;  %vm1079_vm8 = vcmp.eq.s32.totalorder %v1074_v10, 2  ;;  %vm1075_vm9 = vcmp.lt.s32.totalorder %v1074_v10, 2 }
 0x251   :  { %v1751_v14 = vadd.s32 4294967294, %v944_v57  ;;  %v1846_v8 = vpack.c.bf16 %v875_v28, %v771_v21  ;;  %v1100_v21 = vpop.permute.xlu1 %1099  ;;  %v1095_v57 = vpop.permute.xlu0 %1094 }
 0x253   :  { %vm1752_vm2 = vcmp.lt.s32.totalorder %v1751_v14, 0  ;;  %1847 = vmatprep.subr.bf16.mxu1 %v1846_v8 }
 0x254   :  { %v947_v43 = vsel %vm1752_vm2, 0, %v1751_v14  ;;  %1849 = vmatpush3.bf16.msra.mxu1 %v1846_v8 }
 0x255   :  { %v948_v37 = vsub.s32 32, %v947_v43  ;;  %v952_v5 = vsub.s32 4294967266, %v947_v43  ;;  %v949_v29 = vshll.u32 %v940_v52, %v947_v43  ;;  %v970_v52 = vand.u32 3, %v969_v18  ;;  %v1110_v43 = vpop.permute.xlu1 %1109 }
 0x257   :  { %v950_v39 = vshrl.u32 %v932_v36, %v948_v37  ;;  %v953_v2 = vadd.s32 127, %v952_v5  ;;  %vm975_vm10 = vcmp.eq.s32.totalorder %v970_v52, 2  ;;  %vm972_vm11 = vcmp.eq.s32.totalorder %v970_v52, 0 }
 0x258   :  { %v1951_v58 = vpop.eup %1950  ;;  %vm971_vm13 = vcmp.lt.s32.totalorder %v970_v52, 2 }
 0x259   :  { %v951_v48 = vor.u32 %v950_v39, %v949_v29  ;;  %v954_v19 = vshll.u32 %v953_v2, 23  ;;  %v1953_v63 = vpop.eup %1952  ;;  %v1080_v46 = vxor.u32 2147483648, %v1951_v58 }
 0x25a   :  { %v1077_v44 = vxor.u32 2147483648, %v1953_v63 }
 0x25b   :  { %v955_v6 = vor.u32 4788187, %v954_v19  ;;  %v958_v55 = vcvt.s32.f32 %v951_v48  ;;  %v1081_v26 = vsel %vm1079_vm8, %v1080_v46, %v1953_v63  ;;  %v1105_v19 = vpop.permute.xlu0 %1104 }
 0x25c   :  { %v1078_v30 = vsel %vm1076_vm7, %v1951_v58, %v1077_v44 }
 0x25d   :  { %v956_v53 = vand.u32 2147483647, %v955_v6  ;;  %v1082_v0 = vsel %vm1075_vm9, %v1078_v30, %v1081_v26 }
 0x25e   :  { %v1083_v47 = vsel %vm1072_vm12, nan, %v1082_v0 }
 0x25f   :  { %v959_v42 = vmul.f32 %v958_v55, %v956_v53 }
 0x261   :  { %v960_v27 = vxor.u32 2147483648, %v959_v42 }
 0x263   :  { %v961_v13 = vsel %vm878_vm5, %v960_v27, %v959_v42 }
 0x264   :  { %v964_v61 = vsel %vm877_vm6, %v2398_v59, %v961_v13  ;;  %v2006_v59 = vmov 0.0|0.0  }
 0x265   :  { %1954 = vcosq.f32 %v964_v61  ;;  %1854 = vmatprep.subr.bf16.mxu0 %v2006_v59 }
 0x266   :  { %1956 = vsinq.f32 %v964_v61 }
 0x26f   :  { %v1955_v54 = vpop.eup %1954 }
 0x270   :  { %v1957_v56 = vpop.eup %1956  ;;  %v976_v12 = vxor.u32 2147483648, %v1955_v54 }
 0x271   :  { %v973_v62 = vxor.u32 2147483648, %v1957_v56 }
 0x272   :  { %v977_v45 = vsel %vm975_vm10, %v976_v12, %v1957_v56 }
 0x273   :  { %v974_v7 = vsel %vm972_vm11, %v1955_v54, %v973_v62 }
 0x274   :  { %v978_v11 = vsel %vm971_vm13, %v974_v7, %v977_v45 }
 0x275   :  { %v979_v35 = vsel %vm968_vm14, nan, %v978_v11 }
 0x276   :  { %v1850_v9 = vpack.c.bf16 %v1083_v47, %v979_v35 }
 0x278   :  { %1851 = vmatprep.subr.bf16.mxu1 %v1850_v9 }
 0x279   :  { %1853 = vmatpush3.bf16.msra.mxu1 %v1850_v9 }
 0x27c   :  { %1822 = vmatmul.mubr.msk.f32.vlgmr.msra.gmra.mrb[0].mxu1 %vm570_vm1, %v1085_v34 }
 0x27d   :  { %1824 = vmatprep.mubr.msk.f32.mxu1 %vm570_vm1, %v1086_v33 }
 0x280   :  { %1825 = vmatmul.mubr.msk.f32.gmra.mrb[2].mxu1 %vm570_vm1, %v1087_v41 }
 0x34f   :  { %v1823_v23 = vpop.f32.mrb[0].mxu1 }
 0x350   :  { %v2693_v50 = vadd.f32 %v1823_v23, %v1100_v21  ;;  %v1190_v28 = vpop.f32.mrb[1].mxu1 }
 0x351   :  { %v2695_v32 = vadd.f32 %v1190_v28, %v1095_v57 }
 0x352   :  { %v1313_v14 = vand.u32 2147483647, %v2693_v50  ;;  %v1316_v8 = vand.u32 2139095040, %v2693_v50  ;;  %vm1315_vm13 = vcmp.lt.s32.totalorder %v2693_v50, 0 }
 0x353   :  { %v1209_v40 = vand.u32 2147483647, %v2695_v32  ;;  %v1212_v36 = vand.u32 2139095040, %v2695_v32  ;;  %v1826_v37 = vpop.f32.mrb[2].mxu1 }
 0x354   :  { %v1317_v5 = vshrl.u32 %v1316_v8, 23  ;;  %v1320_v1 = vand.u32 8388607, %v1313_v14  ;;  %v2703_v29 = vadd.f32 %v1826_v37, %v1110_v43  ;;  %v1200_v39 = vpop.f32.mrb[3].mxu1 }
 0x355   :  { %v1213_v2 = vshrl.u32 %v1212_v36, 23  ;;  %v1216_v38 = vand.u32 8388607, %v1209_v40  ;;  %v2708_v49 = vadd.f32 %v1200_v39, %v1105_v19 }
 0x356   :  { %v1765_v48 = vadd.s32 4294967169, %v1317_v5  ;;  %v1524_v6 = vand.u32 2139095040, %v2703_v29  ;;  %v1321_v53 = vor.u32 8388608, %v1320_v1  ;;  %v1521_v27 = vand.u32 2147483647, %v2703_v29 }
 0x357   :  { %v1761_v60 = vadd.s32 4294967169, %v1213_v2  ;;  %v1217_v42 = vor.u32 8388608, %v1216_v38  ;;  %v1417_v63 = vand.u32 2147483647, %v2708_v49 }
 0x358   :  { %v1323_v55 = vadd.s32 1, %v1765_v48  ;;  %v1525_v16 = vshrl.u32 %v1524_v6, 23  ;;  %v2712_v3 = vshll.u32 %v1321_v53, 8  ;;  %v2720_v44 = vand.u32 8388607, %v1521_v27 }
 0x359   :  { %v1219_v25 = vadd.s32 1, %v1761_v60  ;;  %v2716_v18 = vshll.u32 %v1217_v42, 8 }
 0x35a   :  { %vm1324_vm15 = vcmp.gt.s32.totalorder %v1323_v55, 0  ;;  %v1773_v4 = vadd.s32 4294967169, %v1525_v16 }
 0x35b   :  { %v1325_v13 = vsel %vm1324_vm15, %v1323_v55, 0  ;;  %vm1220_vm0 = vcmp.gt.s32.totalorder %v1219_v25, 0 }
 0x35c   :  { %v1326_v61 = vshrl.u32 %v1325_v13, 5  ;;  %v1327_v51 = vand.u32 31, %v1325_v13  ;;  %v1221_v58 = vsel %vm1220_vm0, %v1219_v25, 0  ;;  %v2723_v26 = vadd.s32 1, %v1773_v4 }
 0x35d   :  { %v2714_v10 = vshrl.u32 %v1221_v58, 5  ;;  %v1223_v30 = vand.u32 31, %v1221_v58 }
 0x35e   :  { %v1328_v46 = vsub.s32 32, %v1327_v51  ;;  %v1330_v52 = vshll.u32 %v2000_v15, %v1327_v51  ;;  %v1333_v54 = vshll.u32 %v2001_v17, %v1327_v51  ;;  %v1336_v56 = vshll.u32 %v2002_v20, %v1327_v51 }
 0x35f   :  { %v1339_v12 = vshll.u32 %v2003_v22, %v1327_v51  ;;  %v1342_v0 = vshll.u32 %v2004_v24, %v1327_v51  ;;  %vm1345_vm2 = vcmp.lt.s32.totalorder %v1326_v61, 1  ;;  %vm1346_vm3 = vcmp.lt.s32.totalorder %v1326_v61, 2 }
 0x360   :  { %v1331_v62 = vshrl.u32 %v2001_v17, %v1328_v46  ;;  %v1334_v45 = vshrl.u32 %v2002_v20, %v1328_v46  ;;  %v1337_v7 = vshrl.u32 %v2003_v22, %v1328_v46  ;;  %v1329_v47 = vshrl.u32 %v2000_v15, %v1328_v46 }
 0x361   :  { %v1340_v11 = vshrl.u32 %v2004_v24, %v1328_v46  ;;  %v1343_v35 = vshrl.u32 %v2005_v31, %v1328_v46  ;;  %v1224_v41 = vsub.s32 32, %v1223_v30  ;;  %vm1347_vm4 = vcmp.lt.s32.totalorder %v1326_v61, 3 }
 0x362   :  { %v1332_v9 = vor.u32 %v1331_v62, %v1330_v52  ;;  %v1335_v34 = vor.u32 %v1334_v45, %v1333_v54  ;;  %v1338_v33 = vor.u32 %v1337_v7, %v1336_v56  ;;  %vm1348_vm5 = vcmp.lt.s32.totalorder %v1326_v61, 4 }
 0x363   :  { %v1341_v21 = vor.u32 %v1340_v11, %v1339_v12  ;;  %v1344_v23 = vor.u32 %v1343_v35, %v1342_v0  ;;  %v1226_v1 = vshll.u32 %v2000_v15, %v1223_v30  ;;  %v1227_v38 = vshrl.u32 %v2001_v17, %v1224_v41 }
 0x364   :  { %v1349_v57 = vsel %vm1345_vm2, %v1329_v47, %v1332_v9  ;;  %v1350_v28 = vsel %vm1348_vm5, %v1338_v33, 2102212464  ;;  %v1353_v8 = vsel %vm1345_vm2, %v1332_v9, %v1335_v34  ;;  %v1357_v43 = vsel %vm1345_vm2, %v1335_v34, %v1338_v33 }
 0x365   :  { %v1351_v36 = vsel %vm1347_vm4, %v1335_v34, %v1350_v28  ;;  %v1354_v37 = vsel %vm1348_vm5, %v1341_v21, 920167782  ;;  %v1358_v5 = vsel %vm1348_vm5, %v1344_v23, 1326507024  ;;  %v1229_v48 = vshll.u32 %v2001_v17, %v1223_v30 }
 0x366   :  { %v1355_v39 = vsel %vm1347_vm4, %v1338_v33, %v1354_v37  ;;  %v1359_v2 = vsel %vm1347_vm4, %v1341_v21, %v1358_v5  ;;  %v1352_v19 = vsel %vm1346_vm3, %v1349_v57, %v1351_v36  ;;  %v1230_v53 = vshrl.u32 %v2002_v20, %v1224_v41 }
 0x367   :  { %v1356_v60 = vsel %vm1346_vm3, %v1353_v8, %v1355_v39  ;;  %v1360_v6 = vsel %vm1346_vm3, %v1357_v43, %v1359_v2  ;;  %v1228_v13 = vor.u32 %v1227_v38, %v1226_v1  ;;  %v1232_v51 = vshll.u32 %v2002_v20, %v1223_v30 }
 0x368   :  { %v2746_v55 = vmul.u32.u64.low %v2712_v3, %v1360_v6  ;;  %v2747_v42 = vmul.u32.u64.high %v2712_v3, %v1360_v6, %v2746_v55  ;;  %v2750_v25 = vmul.u32.u64.low %v2712_v3, %v1356_v60  ;;  %v2751_v16 = vmul.u32.u64.high %v2712_v3, %v1356_v60, %v2750_v25 }
 0x369   :  { %v1231_v4 = vor.u32 %v1230_v53, %v1229_v48  ;;  %v1233_v58 = vshrl.u32 %v2003_v22, %v1224_v41  ;;  %v1225_v46 = vshrl.u32 %v2000_v15, %v1224_v41  ;;  %v1235_v61 = vshll.u32 %v2003_v22, %v1223_v30 }
 0x36a   :  { %v1236_v52 = vshrl.u32 %v2004_v24, %v1224_v41  ;;  %v1239_v54 = vshrl.u32 %v2005_v31, %v1224_v41  ;;  %v1368_v56 = vmul.u32 %v2712_v3, %v1352_v19  ;;  %v1238_v0 = vshll.u32 %v2004_v24, %v1223_v30 }
 0x36b   :  { %v1234_v12 = vor.u32 %v1233_v58, %v1232_v51  ;;  %vm1241_vm6 = vcmp.lt.s32.totalorder %v2714_v10, 1  ;;  %vm1370_vm7 = vc.u32 %v2747_v42, %v2750_v25  ;;  %v1371_v62 = vadd.s32 1, %v2751_v16 }
 0x36c   :  { %v1237_v45 = vor.u32 %v1236_v52, %v1235_v61  ;;  %vm1242_vm8 = vcmp.lt.s32.totalorder %v2714_v10, 2  ;;  %v1240_v7 = vor.u32 %v1239_v54, %v1238_v0  ;;  %vm1243_vm9 = vcmp.lt.s32.totalorder %v2714_v10, 3 }
 0x36d   :  { %vm1244_vm10 = vcmp.lt.s32.totalorder %v2714_v10, 4  ;;  %v1249_v47 = vsel %vm1241_vm6, %v1228_v13, %v1231_v4  ;;  %v1372_v3 = vsel %vm1370_vm7, %v1371_v62, %v2751_v16  ;;  %v1253_v30 = vsel %vm1241_vm6, %v1231_v4, %v1234_v12 }
 0x36e   :  { %v1246_v11 = vsel %vm1244_vm10, %v1234_v12, 2102212464  ;;  %v1250_v35 = vsel %vm1244_vm10, %v1237_v45, 920167782  ;;  %v1373_v9 = vadd.s32 %v1372_v3, %v1368_v56  ;;  %v1245_v34 = vsel %vm1241_vm6, %v1225_v46, %v1228_v13 }
 0x36f   :  { %v1251_v33 = vsel %vm1243_vm9, %v1234_v12, %v1250_v35  ;;  %v1254_v41 = vsel %vm1244_vm10, %v1240_v7, 1326507024  ;;  %v1247_v21 = vsel %vm1243_vm9, %v1231_v4, %v1246_v11  ;;  %vm1532_vm11 = vcmp.gt.s32.totalorder %v2723_v26, 0 }
 0x370   :  { %v1252_v23 = vsel %vm1242_vm8, %v1249_v47, %v1251_v33  ;;  %v1255_v57 = vsel %vm1243_vm9, %v1237_v45, %v1254_v41  ;;  %v1374_v28 = vadd.s32 536870912, %v1373_v9  ;;  %v1529_v1 = vor.u32 8388608, %v2720_v44 }
 0x371   :  { %v1256_v8 = vsel %vm1242_vm8, %v1253_v30, %v1255_v57  ;;  %v2774_v43 = vmul.u32.u64.low %v2716_v18, %v1252_v23  ;;  %v2775_v36 = vmul.u32.u64.high %v2716_v18, %v1252_v23, %v2774_v43  ;;  %v1533_v39 = vsel %vm1532_vm11, %v2723_v26, 0 }
 0x372   :  { %v2779_v37 = vmul.u32.u64.low %v2716_v18, %v1256_v8  ;;  %v2780_v5 = vmul.u32.u64.high %v2716_v18, %v1256_v8, %v2779_v37  ;;  %v1375_v2 = vshrl.u32 %v1374_v28, 30  ;;  %v1248_v38 = vsel %vm1242_vm8, %v1245_v34, %v1247_v21 }
 0x373   :  { %v1535_v48 = vand.u32 31, %v1533_v39  ;;  %v1420_v19 = vand.u32 2139095040, %v2708_v49  ;;  %v1267_v6 = vadd.s32 1, %v2775_v36  ;;  %v1264_v55 = vmul.u32 %v2716_v18, %v1248_v38 }
 0x374   :  { %v1376_v60 = vshll.u32 %v1375_v2, 30  ;;  %vm1266_vm12 = vc.u32 %v2780_v5, %v2774_v43  ;;  %v2793_v44 = vand.u32 8388607, %v1417_v63  ;;  %v2798_v16 = vshll.u32 %v1529_v1, 8 }
 0x375   :  { %v1536_v53 = vsub.s32 32, %v1535_v48  ;;  %v1268_v10 = vsel %vm1266_vm12, %v1267_v6, %v2775_v36  ;;  %v1421_v13 = vshrl.u32 %v1420_v19, 23  ;;  %v1538_v51 = vshll.u32 %v2000_v15, %v1535_v48 }
 0x376   :  { %v2795_v26 = vsub.s32 %v1373_v9, %v1376_v60  ;;  %v1269_v4 = vadd.s32 %v1268_v10, %v1264_v55  ;;  %v1369_v46 = vadd.s32 %v2750_v25, %v2747_v42  ;;  %v1541_v52 = vshll.u32 %v2001_v17, %v1535_v48 }
 0x377   :  { %v1539_v18 = vshrl.u32 %v2001_v17, %v1536_v53  ;;  %v1542_v58 = vshrl.u32 %v2002_v20, %v1536_v53  ;;  %v1545_v54 = vshrl.u32 %v2003_v22, %v1536_v53  ;;  %v1534_v12 = vshrl.u32 %v1533_v39, 5 }
 0x378   :  { %v1379_v61 = vsub.s32 0, %v2795_v26  ;;  %v1270_v56 = vadd.s32 536870912, %v1269_v4  ;;  %v1544_v62 = vshll.u32 %v2002_v20, %v1535_v48  ;;  %v1547_v47 = vshll.u32 %v2003_v22, %v1535_v48 }
 0x379   :  { %v1540_v0 = vor.u32 %v1539_v18, %v1538_v51  ;;  %v1543_v7 = vor.u32 %v1542_v58, %v1541_v52  ;;  %v1548_v3 = vshrl.u32 %v2004_v24, %v1536_v53  ;;  %v1399_v11 = vsub.s32 4, %v1375_v2 }
 0x37a   :  { %v1766_v45 = vmin.u32 %v1379_v61, %v2795_v26  ;;  %v2812_v42 = vshrl.u32 %v1270_v56, 30  ;;  %v1546_v25 = vor.u32 %v1545_v54, %v1544_v62  ;;  %v1551_v35 = vshrl.u32 %v2005_v31, %v1536_v53 }
 0x37b   :  { %v1537_v9 = vshrl.u32 %v2000_v15, %v1536_v53  ;;  %v1549_v34 = vor.u32 %v1548_v3, %v1547_v47  ;;  %v1550_v33 = vshll.u32 %v2004_v24, %v1535_v48  ;;  %vm1553_vm14 = vcmp.lt.s32.totalorder %v1534_v12, 1 }
 0x37c   :  { %v1381_v30 = vclz %v1766_v45  ;;  %v1272_v41 = vshll.u32 %v2812_v42, 30  ;;  %vm1555_vm15 = vcmp.lt.s32.totalorder %v1534_v12, 3  ;;  %vm1556_vm0 = vcmp.lt.s32.totalorder %v1534_v12, 4 }
 0x37d   :  { %v1552_v23 = vor.u32 %v1551_v35, %v1550_v33  ;;  %v1561_v57 = vsel %vm1553_vm14, %v1540_v0, %v1543_v7  ;;  %v1562_v28 = vsel %vm1556_vm0, %v1549_v34, 920167782  ;;  %vm1554_vm2 = vcmp.lt.s32.totalorder %v1534_v12, 2 }
 0x37e   :  { %v1767_v21 = vadd.s32 4294967294, %v1381_v30  ;;  %v2820_v8 = vsub.s32 %v1269_v4, %v1272_v41  ;;  %v1558_v36 = vsel %vm1556_vm0, %v1546_v25, 2102212464  ;;  %v1563_v37 = vsel %vm1555_vm15, %v1546_v25, %v1562_v28 }
 0x37f   :  { %v1400_v1 = vsel %vm1315_vm13, %v1399_v11, %v1375_v2  ;;  %v1564_v39 = vsel %vm1554_vm2, %v1561_v57, %v1563_v37  ;;  %v1769_v38 = vadd.s32 4294967169, %v1421_v13  ;;  %v1557_v60 = vsel %vm1553_vm14, %v1537_v9, %v1540_v0 }
 0x380   :  { %vm1768_vm3 = vcmp.lt.s32.totalorder %v1767_v21, 0  ;;  %v1275_v19 = vsub.s32 0, %v2820_v8  ;;  %v1565_v6 = vsel %vm1553_vm14, %v1543_v7, %v1546_v25  ;;  %v1559_v10 = vsel %vm1555_vm15, %v1543_v7, %v1558_v36 }
 0x381   :  { %v1384_v48 = vsel %vm1768_vm3, 0, %v1767_v21  ;;  %v1566_v4 = vsel %vm1556_vm0, %v1552_v23, 1326507024  ;;  %vm1211_vm4 = vcmp.lt.s32.totalorder %v2695_v32, 0  ;;  %v1427_v45 = vadd.s32 1, %v1769_v38 }
 0x382   :  { %v1385_v53 = vsub.s32 32, %v1384_v48  ;;  %v1389_v55 = vsub.s32 4294967266, %v1384_v48  ;;  %v1762_v2 = vmin.u32 %v1275_v19, %v2820_v8  ;;  %v1567_v51 = vsel %vm1555_vm15, %v1549_v34, %v1566_v4 }
 0x383   :  { %v2836_v13 = vmul.u32.u64.low %v2798_v16, %v1564_v39  ;;  %v2837_v18 = vmul.u32.u64.high %v2798_v16, %v1564_v39, %v2836_v13  ;;  %v1386_v58 = vshll.u32 %v2795_v26, %v1384_v48  ;;  %v1568_v54 = vsel %vm1554_vm2, %v1565_v6, %v1567_v51 }
 0x384   :  { %v1387_v61 = vshrl.u32 %v1369_v46, %v1385_v53  ;;  %v1390_v52 = vadd.s32 127, %v1389_v55  ;;  %v1277_v56 = vclz %v1762_v2  ;;  %vm2848_vm5 = vcmp.le.f32.partialorder %v1313_v14, 0.7853982 }
 0x385   :  { %v2843_v0 = vmul.u32.u64.low %v2798_v16, %v1568_v54  ;;  %v2844_v62 = vmul.u32.u64.high %v2798_v16, %v1568_v54, %v2843_v0  ;;  %v1560_v26 = vsel %vm1554_vm2, %v1557_v60, %v1559_v10  ;;  %v1579_v11 = vadd.s32 1, %v2837_v18 }
 0x386   :  { %v1388_v47 = vor.u32 %v1387_v61, %v1386_v58  ;;  %v1391_v3 = vshll.u32 %v1390_v52, 23  ;;  %v1763_v46 = vadd.s32 4294967294, %v1277_v56  ;;  %v1425_v25 = vor.u32 8388608, %v2793_v44 }
 0x387   :  { %vm1428_vm6 = vcmp.gt.s32.totalorder %v1427_v45, 0  ;;  %v1402_v30 = vsel %vm2848_vm5, 0, %v1400_v1  ;;  %v1295_v9 = vsub.s32 4, %v2812_v42  ;;  %v1576_v33 = vmul.u32 %v2798_v16, %v1560_v26 }
 0x388   :  { %v1392_v35 = vor.u32 4788187, %v1391_v3  ;;  %v1429_v14 = vsel %vm1428_vm6, %v1427_v45, 0  ;;  %v1395_v34 = vcvt.s32.f32 %v1388_v47  ;;  %vm1764_vm7 = vcmp.lt.s32.totalorder %v1763_v46, 0 }
 0x389   :  { %vm1578_vm8 = vc.u32 %v2844_v62, %v2836_v13  ;;  %v1280_v41 = vsel %vm1764_vm7, 0, %v1763_v46  ;;  %v1431_v44 = vand.u32 31, %v1429_v14  ;;  %v1265_v23 = vadd.s32 %v2774_v43, %v2780_v5 }
 0x38a   :  { %v1393_v12 = vand.u32 2147483647, %v1392_v35  ;;  %v1580_v21 = vsel %vm1578_vm8, %v1579_v11, %v2837_v18  ;;  %v1281_v57 = vsub.s32 32, %v1280_v41  ;;  %v1285_v28 = vsub.s32 4294967266, %v1280_v41 }
 0x38b   :  { %v1581_v36 = vadd.s32 %v1580_v21, %v1576_v33  ;;  %v2864_v1 = vadd.s32 3, %v1402_v30  ;;  %vm2868_vm9 = vcmp.le.f32.partialorder %v1209_v40, 0.7853982  ;;  %v2875_v39 = vsel %vm1211_vm4, %v1295_v9, %v2812_v42 }
 0x38c   :  { %v1396_v37 = vmul.f32 %v1395_v34, %v1393_v12  ;;  %v1432_v38 = vsub.s32 32, %v1431_v44  ;;  %v1282_v43 = vshll.u32 %v2820_v8, %v1280_v41  ;;  %v1283_v5 = vshrl.u32 %v1265_v23, %v1281_v57 }
 0x38d   :  { %v1286_v48 = vadd.s32 127, %v1285_v28  ;;  %v1582_v19 = vadd.s32 536870912, %v1581_v36  ;;  %v2878_v6 = vshrl.u32 %v1429_v14, 5  ;;  %v1434_v53 = vshll.u32 %v2000_v15, %v1431_v44 }
 0x38e   :  { %v1397_v60 = vxor.u32 2147483648, %v1396_v37  ;;  %v1435_v40 = vshrl.u32 %v2001_v17, %v1432_v38  ;;  %v1284_v55 = vor.u32 %v1283_v5, %v1282_v43  ;;  %v1441_v42 = vshrl.u32 %v2003_v22, %v1432_v38 }
 0x38f   :  { %v1287_v10 = vshll.u32 %v1286_v48, 23  ;;  %v2882_v4 = vshrl.u32 %v1582_v19, 30  ;;  %v1437_v8 = vshll.u32 %v2001_v17, %v1431_v44  ;;  %v1438_v51 = vshrl.u32 %v2002_v20, %v1432_v38 }
 0x390   :  { %v1398_v2 = vsel %vm1315_vm13, %v1397_v60, %v1396_v37  ;;  %v1440_v18 = vshll.u32 %v2002_v20, %v1431_v44  ;;  %v1436_v54 = vor.u32 %v1435_v40, %v1434_v53  ;;  %v1291_v56 = vcvt.s32.f32 %v1284_v55 }
 0x391   :  { %v1401_v58 = vsel %vm2848_vm5, %v2693_v50, %v1398_v2  ;;  %v1288_v61 = vor.u32 4788187, %v1287_v10  ;;  %v1584_v52 = vshll.u32 %v2882_v4, 30  ;;  %v1443_v0 = vshll.u32 %v2003_v22, %v1431_v44 }
 0x392   :  { %1958 = vcosq.f32 %v1401_v58  ;;  %v1444_v45 = vshrl.u32 %v2004_v24, %v1432_v38  ;;  %v1442_v3 = vor.u32 %v1441_v42, %v1440_v18  ;;  %v1439_v20 = vor.u32 %v1438_v51, %v1437_v8 }
 0x393   :  { %1960 = vsinq.f32 %v1401_v58  ;;  %v1289_v17 = vand.u32 2147483647, %v1288_v61  ;;  %v2896_v47 = vsub.s32 %v1581_v36, %v1584_v52  ;;  %v1446_v7 = vshll.u32 %v2004_v24, %v1431_v44 }
 0x394   :  { %v1445_v26 = vor.u32 %v1444_v45, %v1443_v0  ;;  %v1447_v46 = vshrl.u32 %v2005_v31, %v1432_v38  ;;  %v1298_v35 = vsel %vm2868_vm9, 0, %v2875_v39  ;;  %v1465_v30 = vshll.u32 %v1425_v25, 8 }
 0x395   :  { %v1292_v11 = vmul.f32 %v1291_v56, %v1289_v17  ;;  %v1587_v22 = vsub.s32 0, %v2896_v47  ;;  %v1433_v9 = vshrl.u32 %v2000_v15, %v1432_v38  ;;  %vm1449_vm10 = vcmp.lt.s32.totalorder %v2878_v6, 1 }
 0x396   :  { %v1448_v14 = vor.u32 %v1447_v46, %v1446_v7  ;;  %vm1452_vm11 = vcmp.lt.s32.totalorder %v2878_v6, 4  ;;  %vm1450_vm12 = vcmp.lt.s32.totalorder %v2878_v6, 2  ;;  %vm1451_vm13 = vcmp.lt.s32.totalorder %v2878_v6, 3 }
 0x397   :  { %v1293_v34 = vxor.u32 2147483648, %v1292_v11  ;;  %v1774_v24 = vmin.u32 %v1587_v22, %v2896_v47  ;;  %v1454_v31 = vsel %vm1452_vm11, %v1442_v3, 2102212464  ;;  %v1453_v33 = vsel %vm1449_vm10, %v1433_v9, %v1436_v54 }
 0x398   :  { %v1457_v12 = vsel %vm1449_vm10, %v1436_v54, %v1439_v20  ;;  %v1458_v15 = vsel %vm1452_vm11, %v1445_v26, 920167782  ;;  %v1461_v44 = vsel %vm1449_vm10, %v1439_v20, %v1442_v3  ;;  %v1455_v57 = vsel %vm1451_vm13, %v1439_v20, %v1454_v31 }
 0x399   :  { %v1294_v25 = vsel %vm1211_vm4, %v1293_v34, %v1292_v11  ;;  %v1589_v41 = vclz %v1774_v24  ;;  %v1459_v21 = vsel %vm1451_vm13, %v1442_v3, %v1458_v15  ;;  %v1462_v36 = vsel %vm1452_vm11, %v1448_v14, 1326507024 }
 0x39a   :  { %v1297_v23 = vsel %vm2868_vm9, %v2695_v32, %v1294_v25  ;;  %v1460_v28 = vsel %vm1450_vm12, %v1457_v12, %v1459_v21  ;;  %v1463_v39 = vsel %vm1451_vm13, %v1445_v26, %v1462_v36  ;;  %v1407_v38 = vand.u32 3, %v2864_v1 }
 0x39b   :  { %1962 = vcosq.f32 %v1297_v23  ;;  %v1775_v37 = vadd.s32 4294967294, %v1589_v41  ;;  %v1464_v5 = vsel %vm1450_vm12, %v1461_v44, %v1463_v39  ;;  %v1456_v60 = vsel %vm1450_vm12, %v1453_v33, %v1455_v57 }
 0x39c   :  { %v1959_v43 = vpop.eup %1958  ;;  %1964 = vsinq.f32 %v1297_v23  ;;  %v2926_v48 = vmul.u32.u64.low %v1465_v30, %v1460_v28  ;;  %v2927_v16 = vmul.u32.u64.high %v1465_v30, %v1460_v28, %v2926_v48  ;;  %v1302_v55 = vadd.s32 3, %v1298_v35 }
 0x39d   :  { %v1961_v19 = vpop.eup %1960  ;;  %vm1776_vm14 = vcmp.lt.s32.totalorder %v1775_v37, 0  ;;  %v2932_v53 = vmul.u32.u64.low %v1465_v30, %v1464_v5  ;;  %v2933_v40 = vmul.u32.u64.high %v1465_v30, %v1464_v5, %v2932_v53  ;;  %vm1405_vm15 = vweird.f32 %v2693_v50 }
 0x39e   :  { %v1592_v10 = vsel %vm1776_vm14, 0, %v1775_v37  ;;  %v1410_v1 = vxor.u32 2147483648, %v1961_v19  ;;  %vm1409_vm0 = vcmp.eq.s32.totalorder %v1407_v38, 0  ;;  %v1472_v2 = vmul.u32 %v1465_v30, %v1456_v60 }
 0x39f   :  { %v1597_v42 = vsub.s32 4294967266, %v1592_v10  ;;  %v1475_v8 = vadd.s32 1, %v2927_v16  ;;  %v1413_v18 = vxor.u32 2147483648, %v1959_v43  ;;  %v1593_v58 = vsub.s32 32, %v1592_v10 }
 0x3a0   :  { %v1411_v51 = vsel %vm1409_vm0, %v1959_v43, %v1410_v1  ;;  %vm1474_vm2 = vc.u32 %v2933_v40, %v2926_v48  ;;  %vm1412_vm3 = vcmp.eq.s32.totalorder %v1407_v38, 2  ;;  %v1303_v52 = vand.u32 3, %v1302_v55 }
 0x3a1   :  { %v1598_v61 = vadd.s32 127, %v1597_v42  ;;  %v1476_v6 = vsel %vm1474_vm2, %v1475_v8, %v2927_v16  ;;  %vm1408_vm4 = vcmp.lt.s32.totalorder %v1407_v38, 2  ;;  %v1414_v54 = vsel %vm1412_vm3, %v1413_v18, %v1961_v19 }
 0x3a2   :  { %v1577_v56 = vadd.s32 %v2836_v13, %v2844_v62  ;;  %v1477_v45 = vadd.s32 %v1476_v6, %v1472_v2  ;;  %v1415_v17 = vsel %vm1408_vm4, %v1411_v51, %v1414_v54  ;;  %vm2007_vm5 = vmmov 0  }
 0x3a3   :  { %v1599_v0 = vshll.u32 %v1598_v61, 23  ;;  %v1416_v3 = vsel %vm1405_vm15, nan, %v1415_v17  ;;  %v2008_v46 = vmov 0.0   ;;  %vm1308_vm6 = vcmp.eq.s32.totalorder %v1303_v52, 2 }
 0x3a4   :  { %v1595_v26 = vshrl.u32 %v1577_v56, %v1593_v58  ;;  %v1478_v7 = vadd.s32 536870912, %v1477_v45  ;;  %1835 = vmatprep.mubr.msk.f32.mxu0 %vm2007_vm5, %v2008_v46  ;;  %v1594_v22 = vshll.u32 %v2896_v47, %v1592_v10  ;;  %vm1305_vm7 = vcmp.eq.s32.totalorder %v1303_v52, 0 }
 0x3a5   :  { %v1963_v20 = vpop.eup %1962  ;;  %v1600_v30 = vor.u32 4788187, %v1599_v0  ;;  %vm1304_vm8 = vcmp.lt.s32.totalorder %v1303_v52, 2  ;;  %vm1301_vm9 = vweird.f32 %v2695_v32  ;;  %vm1523_vm11 = vcmp.lt.s32.totalorder %v2703_v29, 0 }
 0x3a6   :  { %v1965_v11 = vpop.eup %1964  ;;  %v1309_v35 = vxor.u32 2147483648, %v1963_v20  ;;  %v1479_v9 = vshrl.u32 %v1478_v7, 30  ;;  %v1596_v14 = vor.u32 %v1595_v26, %v1594_v22  ;;  %v1473_v36 = vadd.s32 %v2926_v48, %v2933_v40 }
 0x3a7   :  { %v1306_v13 = vxor.u32 2147483648, %v1965_v11  ;;  %v1601_v31 = vand.u32 2147483647, %v1600_v30  ;;  %vm2954_vm12 = vcmp.le.f32.partialorder %v1521_v27, 0.7853982  ;;  %v1607_v53 = vsub.s32 4, %v2882_v4 }
 0x3a8   :  { %v1310_v62 = vsel %vm1308_vm6, %v1309_v35, %v1965_v11  ;;  %v1480_v34 = vshll.u32 %v1479_v9, 30  ;;  %v1603_v25 = vcvt.s32.f32 %v1596_v14  ;;  %v1503_v1 = vsub.s32 4, %v1479_v9  ;;  %v1630_v14 = vpop.permute.xlu0 %1629 }
 0x3a9   :  { %v1307_v50 = vsel %vm1305_vm7, %v1963_v20, %v1306_v13  ;;  %v1608_v27 = vsel %vm1523_vm11, %v1607_v53, %v2882_v4  ;;  %vm1419_vm13 = vcmp.lt.s32.totalorder %v2708_v49, 0  ;;  %vm1418_vm14 = vcmp.le.f32.partialorder %v1417_v63, 0.7853982 }
 0x3aa   :  { %v1311_v24 = vsel %vm1304_vm8, %v1307_v50, %v1310_v62  ;;  %v1481_v33 = vsub.s32 %v1477_v45, %v1480_v34  ;;  %v1604_v47 = vmul.f32 %v1603_v25, %v1601_v31  ;;  %v1610_v42 = vsel %vm2954_vm12, 0, %v1608_v27  ;;  %v1625_v62 = vld [vmem:[%s2996_s7] sm:$0x3] }
 0x3ab   :  { %v1312_v12 = vsel %vm1301_vm9, nan, %v1311_v24  ;;  %v1504_v51 = vsel %vm1419_vm13, %v1503_v1, %v1479_v9  ;;  %v1614_v18 = vadd.s32 3, %v1610_v42  ;;  %vm1613_vm5 = vweird.f32 %v2703_v29 }
 0x3ac   :  { %v1855_v15 = vpack.c.bf16 %v1416_v3, %v1312_v12  ;;  %v1483_v41 = vsub.s32 0, %v1481_v33  ;;  %v1605_v23 = vxor.u32 2147483648, %v1604_v47  ;;  %v1506_v4 = vsel %vm1418_vm14, 0, %v1504_v51 }
 0x3ad   :  { %v1615_v52 = vand.u32 3, %v1614_v18  ;;  %v1510_v54 = vadd.s32 3, %v1506_v4  ;;  %vm1509_vm7 = vweird.f32 %v2708_v49  ;;  %vm1705_vm8 = vcmask 123904  }
 0x3ae   :  { %1856 = vmatpush3.bf16.msra.mxu0 %v1855_v15  ;;  %v1770_v21 = vmin.u32 %v1483_v41, %v1481_v33  ;;  %v1606_v32 = vsel %vm1523_vm11, %v1605_v23, %v1604_v47 }
 0x3af   :  { %1857 = vmatprep.subr.bf16.mxu0 %v2006_v59  ;;  %v1609_v16 = vsel %vm2954_vm12, %v2703_v29, %v1606_v32  ;;  %vm1617_vm15 = vcmp.eq.s32.totalorder %v1615_v52, 0  ;;  %vm1620_vm0 = vcmp.eq.s32.totalorder %v1615_v52, 2  ;;  %v1511_v45 = vand.u32 3, %v1510_v54 }
 0x3b0   :  { %v1485_v44 = vclz %v1770_v21  ;;  %1966 = vcosq.f32 %v1609_v16  ;;  %vm1616_vm2 = vcmp.lt.s32.totalorder %v1615_v52, 2 }
 0x3b1   :  { %1968 = vsinq.f32 %v1609_v16  ;;  %vm1516_vm3 = vcmp.eq.s32.totalorder %v1511_v45, 2  ;;  %vm1513_vm4 = vcmp.eq.s32.totalorder %v1511_v45, 0  ;;  %vm1512_vm6 = vcmp.lt.s32.totalorder %v1511_v45, 2 }
 0x3b2   :  { %v1771_v57 = vadd.s32 4294967294, %v1485_v44 }
 0x3b4   :  { %vm1772_vm10 = vcmp.lt.s32.totalorder %v1771_v57, 0 }
 0x3b5   :  { %v1488_v28 = vsel %vm1772_vm10, 0, %v1771_v57 }
 0x3b6   :  { %v1489_v37 = vsub.s32 32, %v1488_v28  ;;  %v1493_v39 = vsub.s32 4294967266, %v1488_v28  ;;  %v1490_v59 = vshll.u32 %v1481_v33, %v1488_v28 }
 0x3b8   :  { %v1491_v43 = vshrl.u32 %v1473_v36, %v1489_v37  ;;  %v1494_v5 = vadd.s32 127, %v1493_v39 }
 0x3ba   :  { %v1492_v19 = vor.u32 %v1491_v43, %v1490_v59  ;;  %v1495_v60 = vshll.u32 %v1494_v5, 23  ;;  %v1967_v61 = vpop.eup %1966 }
 0x3bb   :  { %v1969_v6 = vpop.eup %1968  ;;  %v1621_v0 = vxor.u32 2147483648, %v1967_v61 }
 0x3bc   :  { %v1496_v48 = vor.u32 4788187, %v1495_v60  ;;  %v1499_v55 = vcvt.s32.f32 %v1492_v19  ;;  %v1618_v56 = vxor.u32 2147483648, %v1969_v6 }
 0x3bd   :  { %v1622_v3 = vsel %vm1620_vm0, %v1621_v0, %v1969_v6 }
 0x3be   :  { %v1497_v40 = vand.u32 2147483647, %v1496_v48  ;;  %v1619_v17 = vsel %vm1617_vm15, %v1967_v61, %v1618_v56 }
 0x3bf   :  { %v1623_v7 = vsel %vm1616_vm2, %v1619_v17, %v1622_v3 }
 0x3c0   :  { %v1500_v10 = vmul.f32 %v1499_v55, %v1497_v40  ;;  %v1624_v22 = vsel %vm1613_vm5, nan, %v1623_v7 }
 0x3c2   :  { %v1501_v2 = vxor.u32 2147483648, %v1500_v10 }
 0x3c4   :  { %v1502_v8 = vsel %vm1419_vm13, %v1501_v2, %v1500_v10 }
 0x3c5   :  { %v1505_v58 = vsel %vm1418_vm14, %v2708_v49, %v1502_v8 }
 0x3c6   :  { %1970 = vcosq.f32 %v1505_v58 }
 0x3c7   :  { %1972 = vsinq.f32 %v1505_v58 }
 0x3d0   :  { %v1971_v63 = vpop.eup %1970 }
 0x3d1   :  { %v1973_v20 = vpop.eup %1972  ;;  %v1517_v26 = vxor.u32 2147483648, %v1971_v63 }
 0x3d2   :  { %v1514_v46 = vxor.u32 2147483648, %v1973_v20 }
 0x3d3   :  { %v1518_v11 = vsel %vm1516_vm3, %v1517_v26, %v1973_v20 }
 0x3d4   :  { %v1515_v35 = vsel %vm1513_vm4, %v1971_v63, %v1514_v46 }
 0x3d5   :  { %v1519_v30 = vsel %vm1512_vm6, %v1515_v35, %v1518_v11 }
 0x3d6   :  { %v1520_v9 = vsel %vm1509_vm7, nan, %v1519_v30 }
 0x3d7   :  { %v1858_v13 = vpack.c.bf16 %v1624_v22, %v1520_v9 }
 0x3d9   :  { %1859 = vmatpush3.bf16.msra.mxu0 %v1858_v13 }
 0x3dc   :  { %1836 = vmatmul.mubr.msk.f32.vlgmr.msra.gmra.mrb[4].mxu0 %vm570_vm1, %v1625_v62 }
 0x4af   :  { %v1701_v34 = vpop.f32.mrb[4].mxu0 }
 0x4b0   :  { %v1702_v29 = vadd.f32 %v1701_v34, %v1630_v14  ;;  %v1837_v50 = vpop.f32.mrb[5].mxu0 }
 0x4b2   :  { %1706 = vst.msk [vmem:[#allocation2] sm:$0x3] %vm1705_vm8, %v1702_v29 }
 0x4b3   :  { %1985 = shalt.err (!%p1982_p4)
}
 0x4b4   :  { %s1986_s15 = scalar_lea.hbm %s2998_s9, 32 }
 0x4b5   :  { %p1987_p5 = scmp.ne.s32.totalorder %s2998_s9, %s1986_s15  ;;  %p1990_p6 = scmp.lt.u32.totalorder %s1986_s15, %s2998_s9 }
 0x4b7   :  { %p1992_p7 = pnand %p1990_p6, %p1987_p5 }
 0x4b9   :  { %1995 = shalt.err (!%p1992_p7)
}
 0x4ba   :  { %1716 = dma.vmem_to_hbm [thread:$0]  %s1714_s13, 32, %s2998_s9, [#allocation3]  }
 0x4bb   :  { %1996 = dma.done.wait [#allocation3], 32  }
 0x4bc   :  { %1997 = vsyncadd [#allocation3], 4294967264 }
 0x4bd   :  { %1720 = vsyncpa [#allocation3], 1 }

</bundles_post_ra>
